<compile_context>
chip_gen: v7x
topology: tpu7x:2x2x1
jax: 0.10.0
libtpu: 0.0.40
codegen_flags: <defaults>
</compile_context>

<pallas_src>
import jax
import jax.numpy as jnp
from jax.experimental import pallas as pl
from jax.experimental.pallas import tpu as pltpu

IGNORE_INDEX = -100          # torch.nn.CrossEntropyLoss default ignore_index
_NEG_BIG = -1e30             # finite stand-in for -inf (running max / padded bias)
_MIB = 1024 * 1024


def _round_up(x, m):
    return (x + m - 1) // m * m


def _chip_config():
    """Per-TPU-generation tile sizes / VMEM limit (perf-review-driven)."""
    try:
        kind = jax.devices()[0].device_kind.lower()
    except Exception:  # pragma: no cover - detection is best-effort
        kind = ""
    if "v7" in kind or "7x" in kind:
        # 64 MiB/TC VMEM, 2 TensorCores/chip, roofline crossover ~620 flops/B.
        return dict(tm=1024, tv=1024, vmem=48 * _MIB, cores=2)
    if "v6" in kind:
        # 128 MiB VMEM, roofline crossover ~650 flops/B.
        return dict(tm=1024, tv=2048, vmem=100 * _MIB, cores=1)
    if "v5" in kind:
        # Roofline crossover ~240 flops/B; tm=512 halves per-step overhead.
        # TODO(synk): if the weight DMA is still exposed, add
        # pipeline_mode=pl.Buffered(3) to the weight BlockSpec only.
        return dict(tm=512, tv=2048, vmem=100 * _MIB, cores=1)
    # Unknown generation: conservative, v7x-safe defaults.
    return dict(tm=512, tv=1024, vmem=48 * _MIB, cores=2)


def _vmem_fit(tm, tv, h, budget):
    """Rough per-step VMEM estimate: double-buffered inputs + f32 logits tile."""
    hidden = 2 * tm * h * 2          # bf16 hidden tile, double-buffered
    weight = 2 * h * tv * 2          # bf16 weight tile, double-buffered
    bias = 2 * tv * 4
    logits = tm * tv * 4             # in-kernel f32 logits temporary
    small = 2 * tm * 4 + 2 * tm * 4 + 3 * tm * 4   # labels, loss, scratch
    return hidden + weight + bias + logits + small <= budget


def _lm_head_ce_kernel(h_ref, w_ref, b_ref, lab_ref, loss_ref, m_sc, l_sc, t_sc):
    # h_ref:    [tm, H]  bf16   hidden states for one token tile
    # w_ref:    [H, tv]  bf16   LM-head weight, one vocab tile (streamed)
    # b_ref:    [1, tv]  f32    LM-head bias, one vocab tile (-1e30 on padded cols)
    # lab_ref:  [tm, 1]  i32    shifted next-token labels (global vocab ids)
    # loss_ref: [tm, 1]  f32    per-token masked NLL (written at last vocab tile)
    # m_sc/l_sc/t_sc: [tm, 1] f32 scratch: running max / sum-exp / target logit
    j = pl.program_id(1)
    nv = pl.num_programs(1)

    @pl.when(j == 0)
    def _init():
        m_sc[...] = jnp.full_like(m_sc, _NEG_BIG)
        l_sc[...] = jnp.zeros_like(l_sc)
        t_sc[...] = jnp.zeros_like(t_sc)

    # MXU matmul: bf16 inputs, f32 accumulation. Softmax math stays in f32.
    logits = jnp.dot(h_ref[...], w_ref[...], preferred_element_type=jnp.float32)
    logits = logits + b_ref[...]                                       # [tm, tv] f32

    lab = lab_ref[...]                                                 # [tm, 1] i32
    tv = logits.shape[-1]
    lane = jax.lax.broadcasted_iota(jnp.int32, logits.shape, 1)        # [tm, tv]
    local_lab = lab - j * tv                                           # [tm, 1]

    # Target logit: at most one vocab tile contains the label, so a plain
    # accumulate of a cmp+select is exact (no one-hot f32 temporary). Padded
    # vocab lanes are never selected because valid labels are < true V.
    # TODO(synk): pl.debug_check out-of-range labels (torch errors; here -> lse).
    t_sc[...] += jnp.sum(jnp.where(lane == local_lab, logits, 0.0),
                         axis=-1, keepdims=True)

    # Online softmax normalizer: running max + rescaled sum of exponentials.
    # Padded columns sit at -1e30, so exp(pad - m_new) underflows to 0 exactly.
    m_old = m_sc[...]
    m_new = jnp.maximum(m_old, jnp.max(logits, axis=-1, keepdims=True))
    alpha = jnp.exp(m_old - m_new)
    l_sc[...] = alpha * l_sc[...] + jnp.sum(jnp.exp(logits - m_new),
                                            axis=-1, keepdims=True)
    m_sc[...] = m_new

    @pl.when(j == nv - 1)
    def _finalize():
        lse = m_sc[...] + jnp.log(l_sc[...])
        valid = lab != IGNORE_INDEX
        # (tm,1) writeback is once per token tile -> masked store cost negligible.
        loss_ref[...] = jnp.where(valid, lse - t_sc[...], 0.0)


def prepare_lm_head(w, b, tv=None):
    """One-time LM-head prep; call ONCE outside the jitted training step.

    Casts the weight to bf16 and pads the vocab axis up to a multiple of the
    vocab tile (zero weight / -1e30 bias columns) so the kernel keeps a large,
    lane-aligned tv for any vocabulary size and the training step never
    re-copies or re-casts the full weight per call.
    """
    if tv is None:
        tv = _chip_config()["tv"]
    V = w.shape[1]
    tv = max(128, (min(tv, _round_up(V, 128)) // 128) * 128)
    v_pad = _round_up(V, tv)
    w = w.astype(jnp.bfloat16)
    b = b.astype(jnp.float32)
    if v_pad != V:
        w = jnp.pad(w, ((0, 0), (0, v_pad - V)))
        b = jnp.pad(b, (0, v_pad - V), constant_values=_NEG_BIG)
    return w, b


def lm_head_cross_entropy(hidden, w, b, labels_flat, *, tm=None, tv=None):
    """hidden [N,H], w [H,V], b [V], labels_flat [N] int -> scalar mean CE loss.

    For best performance pass (w, b) through prepare_lm_head() once outside the
    training step; otherwise padding/casting falls back to a per-call copy.
    """
    cfg = _chip_config()
    tm = cfg["tm"] if tm is None else tm
    tv = cfg["tv"] if tv is None else tv

    N, H = hidden.shape
    V = w.shape[1]

    # --- tile sizing ---------------------------------------------------------
    # vocab tile: lane-aligned, as large as the generation config allows
    tv = max(128, (min(tv, _round_up(V, 128)) // 128) * 128)
    # token tile: MXU-aligned multiple of 128, never below 128
    tm = max(128, (min(tm, _round_up(N, 128)) // 128) * 128)

    # Shrink under VMEM pressure: tv first (grid-step knob), then tm (AI knob).
    budget = int(cfg["vmem"] * 0.85)
    while not _vmem_fit(tm, tv, H, budget):
        if tv >= 512 and tv % 256 == 0:
            tv //= 2
        elif tm > 128:
            tm //= 2
        else:
            break
    # TODO(synk): if tm gets VMEM-capped far below the roofline on v7x, swap the
    # grid (vocab outer / token inner) with persistent [N,1] accumulators so the
    # weight streams exactly once.

    # Multi-TC chips (v7x): keep >= `cores` token tiles so no TensorCore idles.
    while cfg["cores"] > 1 and tm > 128 and pl.cdiv(N, tm) < cfg["cores"]:
        tm //= 2

    n_pad = _round_up(N, tm)
    v_pad = _round_up(V, tv)

    # valid-token count depends only on labels -> plain JAX, no kernel output
    count = jnp.sum(labels_flat != IGNORE_INDEX).astype(jnp.float32)

    # --- operand prep ---------------------------------------------------------
    if hidden.dtype != jnp.bfloat16:
        hidden = hidden.astype(jnp.bfloat16)            # cheap: N*H elements
    if w.dtype != jnp.bfloat16:
        # Per-call full-weight cast; prefer prepare_lm_head() outside the step.
        w = w.astype(jnp.bfloat16)
    b = b.astype(jnp.float32)
    if v_pad != V:
        # Per-call full-weight copy; prefer prepare_lm_head() outside the step.
        w = jnp.pad(w, ((0, 0), (0, v_pad - V)))
        b = jnp.pad(b, (0, v_pad - V), constant_values=_NEG_BIG)
    if n_pad != N:
        hidden = jnp.pad(hidden, ((0, n_pad - N), (0, 0)))
        labels_flat = jnp.pad(labels_flat, (0, n_pad - N),
                              constant_values=IGNORE_INDEX)
    labels_2d = labels_flat.reshape(n_pad, 1).astype(jnp.int32)
    b_2d = b.reshape(1, v_pad)

    grid = (n_pad // tm, v_pad // tv)

    cost = pl.CostEstimate(
        flops=2 * n_pad * H * v_pad,
        transcendentals=n_pad * v_pad,
        bytes_accessed=int(n_pad * H * 2             # hidden (bf16)
                           + grid[0] * H * v_pad * 2  # weight re-streamed per token tile
                           + v_pad * 4                # bias
                           + n_pad * 4 + n_pad * 4),  # labels + loss
    )

    per_token_loss = pl.pallas_call(
        _lm_head_ce_kernel,
        out_shape=jax.ShapeDtypeStruct((n_pad, 1), jnp.float32),
        grid_spec=pltpu.PrefetchScalarGridSpec(
            num_scalar_prefetch=0,
            grid=grid,
            in_specs=[
                pl.BlockSpec((tm, H), lambda i, j: (i, 0)),    # hidden tile
                pl.BlockSpec((H, tv), lambda i, j: (0, j)),    # weight tile (streamed)
                pl.BlockSpec((1, tv), lambda i, j: (0, j)),    # bias tile
                pl.BlockSpec((tm, 1), lambda i, j: (i, 0)),    # labels tile
            ],
            out_specs=pl.BlockSpec((tm, 1), lambda i, j: (i, 0)),
            scratch_shapes=[
                pltpu.VMEM((tm, 1), jnp.float32),   # running max
                pltpu.VMEM((tm, 1), jnp.float32),   # running sum-exp
                pltpu.VMEM((tm, 1), jnp.float32),   # target logit accumulator
            ],
        ),
        compiler_params=pltpu.CompilerParams(
            dimension_semantics=("parallel", "arbitrary"),
            vmem_limit_bytes=cfg["vmem"],
        ),
        cost_estimate=cost,
    )(hidden, w, b_2d, labels_2d)

    total = jnp.sum(per_token_loss)
    # torch CrossEntropyLoss(reduction='mean') averages over non-ignored tokens.
    # TODO(synk): torch returns NaN when every label is ignore_index (0/0);
    # we return 0.0 instead to keep the loss finite.
    return total / jnp.maximum(count, 1.0)


def training_module_forward(params, input_tokens, labels):
    """Mirrors TrainingModule.forward for an embedding + LM-head `model`."""
    B, S = input_tokens.shape

    # model(input): embedding lookup -> hidden [B, S, H] (glue, outside kernel).
    # TODO(synk): a full transformer stack would slot in here; only the LM head
    # + cross-entropy (the TrainingModule-specific part) is fused in Pallas.
    hidden = params["emb"][input_tokens]

    # labels = hstack(labels[..., 1:], ignore_labels_cache[:B])
    ignore_col = jnp.full((B, 1), IGNORE_INDEX, dtype=labels.dtype)
    shifted = jnp.concatenate([labels[..., 1:], ignore_col], axis=-1)   # [B, S]

    hidden_flat = hidden.reshape(B * S, -1)
    labels_flat = shifted.reshape(-1)
    return lm_head_cross_entropy(hidden_flat, params["w"], params["b"], labels_flat)


def _reference_loss(emb, w, b, input_tokens, labels):
    """Pure-JAX reference (bf16-rounded weight to match the kernel's inputs)."""
    B, S = input_tokens.shape
    hidden = emb[input_tokens].astype(jnp.float32).reshape(B * S, -1)
    w32 = w.astype(jnp.bfloat16).astype(jnp.float32)
    logits = hidden @ w32 + b.astype(jnp.float32)
    ignore_col = jnp.full((B, 1), IGNORE_INDEX, dtype=labels.dtype)
    lab = jnp.concatenate([labels[..., 1:], ignore_col], axis=-1).reshape(-1)
    lse = jax.nn.logsumexp(logits, axis=-1)
    tgt = jnp.take_along_axis(logits, jnp.maximum(lab, 0)[:, None], axis=-1)[:, 0]
    valid = lab != IGNORE_INDEX
    per = jnp.where(valid, lse - tgt, 0.0)
    return jnp.sum(per) / jnp.maximum(jnp.sum(valid).astype(jnp.float32), 1.0)


if __name__ == "__main__":
    B, S, H, V = 2, 8, 32, 128

    key = jax.random.PRNGKey(0)
    k_emb, k_w, k_b, k_in, k_lab = jax.random.split(key, 5)

    emb = (jax.random.normal(k_emb, (V, H), dtype=jnp.float32) * 0.02
           ).astype(jnp.bfloat16)
    w_raw = jax.random.normal(k_w, (H, V), dtype=jnp.float32) * 0.02
    b_raw = jax.random.normal(k_b, (V,), dtype=jnp.float32) * 0.02

    # One-time LM-head prep (bf16 cast + vocab padding) OUTSIDE the train step.
    w_prep, b_prep = prepare_lm_head(w_raw, b_raw)
    params = {"emb": emb, "w": w_prep, "b": b_prep}

    input_tokens = jax.random.randint(k_in, (B, S), 0, V, dtype=jnp.int32)
    labels = jax.random.randint(k_lab, (B, S), 0, V, dtype=jnp.int32)

    loss = jax.jit(training_module_forward)(params, input_tokens, labels)
    jax.block_until_ready(loss)

    ref = _reference_loss(emb, w_raw, b_raw, input_tokens, labels)
    assert loss.shape == () and bool(jnp.isfinite(loss)), float(loss)
    assert abs(float(loss) - float(ref)) < 1e-2, (float(loss), float(ref))
    print("KERNEL_OK")
</pallas_src>

<mosaic_0001>
module attributes {stable_mosaic.version = 11 : i64} {
  func.func @_lm_head_ce_kernel(%arg0: i32, %arg1: i32, %arg2: memref<128x32xbf16, #tpu.memory_space<vmem>>, %arg3: memref<32x128xbf16, #tpu.memory_space<vmem>>, %arg4: memref<1x128xf32, #tpu.memory_space<vmem>>, %arg5: memref<128x1xi32, #tpu.memory_space<vmem>>, %arg6: memref<128x1xf32, #tpu.memory_space<vmem>>, %arg7: memref<128x1xf32, #tpu.memory_space<vmem>>, %arg8: memref<128x1xf32, #tpu.memory_space<vmem>>, %arg9: memref<128x1xf32, #tpu.memory_space<vmem>>) attributes {dimension_semantics = [#tpu.dimension_semantics<parallel>, #tpu.dimension_semantics<arbitrary>], iteration_bounds = array<i64: 1, 1>, scalar_prefetch = 0 : i64, scratch_operands = 3 : i64, tpu.core_type = #tpu.core_type<tc>, window_params = [{transform_indices = @transform_0, window_bounds = array<i64: 128, 32>}, {transform_indices = @transform_1, window_bounds = array<i64: 32, 128>}, {transform_indices = @transform_2, window_bounds = array<i64: 1, 128>}, {transform_indices = @transform_3, window_bounds = array<i64: 128, 1>}, {transform_indices = @transform_4, window_bounds = array<i64: 128, 1>}]} {
    %c0_i32 = arith.constant 0 : i32
    %0 = arith.cmpi eq, %arg1, %c0_i32 : i32
    %1 = arith.extui %0 : i1 to i32
    %c0_i32_0 = arith.constant 0 : i32
    %2 = arith.cmpi ne, %1, %c0_i32_0 : i32
    scf.if %2 {
      %cst_26 = arith.constant -1.000000e+30 : f32
      %42 = vector.broadcast %cst_26 : f32 to vector<128x1xf32>
      %c0_27 = arith.constant 0 : index
      %c0_28 = arith.constant 0 : index
      %43 = vector.load %arg7[%c0_27, %c0_28] : memref<128x1xf32, #tpu.memory_space<vmem>>, vector<128x1xf32>
      tpu.vector_store %arg7[%c0_27, %c0_28], %42 {strides = array<i32>} : memref<128x1xf32, #tpu.memory_space<vmem>>, vector<128x1xf32>,
      %cst_29 = arith.constant 0.000000e+00 : f32
      %44 = vector.broadcast %cst_29 : f32 to vector<128x1xf32>
      %c0_30 = arith.constant 0 : index
      %c0_31 = arith.constant 0 : index
      %45 = vector.load %arg8[%c0_30, %c0_31] : memref<128x1xf32, #tpu.memory_space<vmem>>, vector<128x1xf32>
      tpu.vector_store %arg8[%c0_30, %c0_31], %44 {strides = array<i32>} : memref<128x1xf32, #tpu.memory_space<vmem>>, vector<128x1xf32>,
      %cst_32 = arith.constant 0.000000e+00 : f32
      %46 = vector.broadcast %cst_32 : f32 to vector<128x1xf32>
      %c0_33 = arith.constant 0 : index
      %c0_34 = arith.constant 0 : index
      %47 = vector.load %arg9[%c0_33, %c0_34] : memref<128x1xf32, #tpu.memory_space<vmem>>, vector<128x1xf32>
      tpu.vector_store %arg9[%c0_33, %c0_34], %46 {strides = array<i32>} : memref<128x1xf32, #tpu.memory_space<vmem>>, vector<128x1xf32>,
    } else {
    }
    %c0 = arith.constant 0 : index
    %c0_1 = arith.constant 0 : index
    %3 = vector.load %arg2[%c0, %c0_1] : memref<128x32xbf16, #tpu.memory_space<vmem>>, vector<128x32xbf16>
    %c0_2 = arith.constant 0 : index
    %c0_3 = arith.constant 0 : index
    %4 = vector.load %arg3[%c0_2, %c0_3] : memref<32x128xbf16, #tpu.memory_space<vmem>>, vector<32x128xbf16>
    %cst = arith.constant dense<0.000000e+00> : vector<128x128xf32>
    %5 = tpu.matmul %3, %4, %cst {dimension_numbers = #tpu.dot_dimension_numbers<[1], [0], [0], [1], [0, 0, 1, 1], [], []>} : vector<128x32xbf16>, vector<32x128xbf16>, vector<128x128xf32> -> vector<128x128xf32>
    %c0_4 = arith.constant 0 : index
    %c0_5 = arith.constant 0 : index
    %6 = vector.load %arg4[%c0_4, %c0_5] : memref<1x128xf32, #tpu.memory_space<vmem>>, vector<1x128xf32>
    %7 = vector.broadcast %6 : vector<1x128xf32> to vector<128x128xf32>
    %8 = arith.addf %5, %7 : vector<128x128xf32>
    %c0_6 = arith.constant 0 : index
    %c0_7 = arith.constant 0 : index
    %9 = vector.load %arg5[%c0_6, %c0_7] : memref<128x1xi32, #tpu.memory_space<vmem>>, vector<128x1xi32>
    %10 = tpu.iota {dimensions = array<i32: 1>} : vector<128x128xi32>
    %c128_i32 = arith.constant 128 : i32
    %11 = arith.muli %arg1, %c128_i32 : i32
    %12 = vector.broadcast %11 : i32 to vector<128x1xi32>
    %13 = arith.subi %9, %12 : vector<128x1xi32>
    %c0_8 = arith.constant 0 : index
    %c0_9 = arith.constant 0 : index
    %14 = vector.load %arg9[%c0_8, %c0_9] : memref<128x1xf32, #tpu.memory_space<vmem>>, vector<128x1xf32>
    %15 = vector.broadcast %13 : vector<128x1xi32> to vector<128x128xi32>
    %16 = arith.cmpi eq, %10, %15 : vector<128x128xi32>
    %cst_10 = arith.constant 0.000000e+00 : f32
    %17 = vector.broadcast %cst_10 : f32 to vector<128x128xf32>
    %18 = arith.select %16, %8, %17 : vector<128x128xi1>, vector<128x128xf32>
    %cst_11 = arith.constant dense<0.000000e+00> : vector<128xf32>
    %19 = vector.multi_reduction <add>, %18, %cst_11 [1] : vector<128x128xf32> to vector<128xf32>
    %20 = vector.shape_cast %19 : vector<128xf32> to vector<128x1xf32>
    %21 = arith.addf %14, %20 : vector<128x1xf32>
    %c0_12 = arith.constant 0 : index
    %c0_13 = arith.constant 0 : index
    %22 = vector.load %arg9[%c0_12, %c0_13] : memref<128x1xf32, #tpu.memory_space<vmem>>, vector<128x1xf32>
    tpu.vector_store %arg9[%c0_12, %c0_13], %21 {strides = array<i32>} : memref<128x1xf32, #tpu.memory_space<vmem>>, vector<128x1xf32>,
    %c0_14 = arith.constant 0 : index
    %c0_15 = arith.constant 0 : index
    %23 = vector.load %arg7[%c0_14, %c0_15] : memref<128x1xf32, #tpu.memory_space<vmem>>, vector<128x1xf32>
    %cst_16 = arith.constant dense<0xFF800000> : vector<128xf32>
    %24 = vector.multi_reduction <maximumf>, %8, %cst_16 [1] : vector<128x128xf32> to vector<128xf32>
    %25 = vector.shape_cast %24 : vector<128xf32> to vector<128x1xf32>
    %26 = arith.maximumf %23, %25 : vector<128x1xf32>
    %27 = arith.subf %23, %26 : vector<128x1xf32>
    %28 = math.exp %27 : vector<128x1xf32>
    %c0_17 = arith.constant 0 : index
    %c0_18 = arith.constant 0 : index
    %29 = vector.load %arg8[%c0_17, %c0_18] : memref<128x1xf32, #tpu.memory_space<vmem>>, vector<128x1xf32>
    %30 = arith.mulf %28, %29 : vector<128x1xf32>
    %31 = vector.broadcast %26 : vector<128x1xf32> to vector<128x128xf32>
    %32 = arith.subf %8, %31 : vector<128x128xf32>
    %33 = math.exp %32 : vector<128x128xf32>
    %cst_19 = arith.constant dense<0.000000e+00> : vector<128xf32>
    %34 = vector.multi_reduction <add>, %33, %cst_19 [1] : vector<128x128xf32> to vector<128xf32>
    %35 = vector.shape_cast %34 : vector<128xf32> to vector<128x1xf32>
    %36 = arith.addf %30, %35 : vector<128x1xf32>
    %c0_20 = arith.constant 0 : index
    %c0_21 = arith.constant 0 : index
    %37 = vector.load %arg8[%c0_20, %c0_21] : memref<128x1xf32, #tpu.memory_space<vmem>>, vector<128x1xf32>
    tpu.vector_store %arg8[%c0_20, %c0_21], %36 {strides = array<i32>} : memref<128x1xf32, #tpu.memory_space<vmem>>, vector<128x1xf32>,
    %c0_22 = arith.constant 0 : index
    %c0_23 = arith.constant 0 : index
    %38 = vector.load %arg7[%c0_22, %c0_23] : memref<128x1xf32, #tpu.memory_space<vmem>>, vector<128x1xf32>
    tpu.vector_store %arg7[%c0_22, %c0_23], %26 {strides = array<i32>} : memref<128x1xf32, #tpu.memory_space<vmem>>, vector<128x1xf32>,
    %c0_i32_24 = arith.constant 0 : i32
    %39 = arith.cmpi eq, %arg1, %c0_i32_24 : i32
    %40 = arith.extui %39 : i1 to i32
    %c0_i32_25 = arith.constant 0 : i32
    %41 = arith.cmpi ne, %40, %c0_i32_25 : i32
    scf.if %41 {
      %c0_26 = arith.constant 0 : index
      %c0_27 = arith.constant 0 : index
      %42 = vector.load %arg7[%c0_26, %c0_27] : memref<128x1xf32, #tpu.memory_space<vmem>>, vector<128x1xf32>
      %c0_28 = arith.constant 0 : index
      %c0_29 = arith.constant 0 : index
      %43 = vector.load %arg8[%c0_28, %c0_29] : memref<128x1xf32, #tpu.memory_space<vmem>>, vector<128x1xf32>
      %44 = math.log %43 : vector<128x1xf32>
      %45 = arith.addf %42, %44 : vector<128x1xf32>
      %c-100_i32 = arith.constant -100 : i32
      %46 = vector.broadcast %c-100_i32 : i32 to vector<128x1xi32>
      %47 = arith.cmpi ne, %9, %46 : vector<128x1xi32>
      %c0_30 = arith.constant 0 : index
      %c0_31 = arith.constant 0 : index
      %48 = vector.load %arg9[%c0_30, %c0_31] : memref<128x1xf32, #tpu.memory_space<vmem>>, vector<128x1xf32>
      %49 = arith.subf %45, %48 : vector<128x1xf32>
      %cst_32 = arith.constant 0.000000e+00 : f32
      %50 = vector.broadcast %cst_32 : f32 to vector<128x1xf32>
      %51 = arith.select %47, %49, %50 : vector<128x1xi1>, vector<128x1xf32>
      %c0_33 = arith.constant 0 : index
      %c0_34 = arith.constant 0 : index
      %52 = vector.load %arg6[%c0_33, %c0_34] : memref<128x1xf32, #tpu.memory_space<vmem>>, vector<128x1xf32>
      tpu.vector_store %arg6[%c0_33, %c0_34], %51 {strides = array<i32>} : memref<128x1xf32, #tpu.memory_space<vmem>>, vector<128x1xf32>,
    } else {
    }
    return
  }
  func.func @transform_0(%arg0: i32, %arg1: i32) -> (i32, i32) {
    %c0_i32 = arith.constant 0 : i32
    %c0_i32_0 = arith.constant 0 : i32
    return %arg0, %c0_i32 : i32, i32
  }
  func.func @transform_1(%arg0: i32, %arg1: i32) -> (i32, i32) {
    %c0_i32 = arith.constant 0 : i32
    %c0_i32_0 = arith.constant 0 : i32
    return %c0_i32, %arg1 : i32, i32
  }
  func.func @transform_2(%arg0: i32, %arg1: i32) -> (i32, i32) {
    %c0_i32 = arith.constant 0 : i32
    %c0_i32_0 = arith.constant 0 : i32
    return %c0_i32, %arg1 : i32, i32
  }
  func.func @transform_3(%arg0: i32, %arg1: i32) -> (i32, i32) {
    %c0_i32 = arith.constant 0 : i32
    %c0_i32_0 = arith.constant 0 : i32
    return %arg0, %c0_i32 : i32, i32
  }
  func.func @transform_4(%arg0: i32, %arg1: i32) -> (i32, i32) {
    %c0_i32 = arith.constant 0 : i32
    %c0_i32_0 = arith.constant 0 : i32
    return %arg0, %c0_i32 : i32, i32
  }
}

</mosaic_0001>

<bundles_post_ra>
// kernel: training_module_forward.1
= control target key start
LH: loop header
LB: loop body
LE: loop exit
PB: predicated region body
PF: predicated region fallthrough
CT: control target
= control target key end

     0   :  { %v1159_v1 = vmov 0   ;;  %vm150_vm0 = vcmask 261120   ;;  %vm22_vm1 = vcmask 7168   ;;  %v1160_v14 = vmov -1e+30   ;;  %s1802_s1 = inlined_call_operand.vmem [shape: bf16[32,128], index: 1, kind: input, shape index: {}]   ;;  %s1803_s0 = inlined_call_operand.vmem [shape: bf16[128,32], index: 0, kind: input, shape index: {}]   ;;  %s1804_s3 = inlined_call_operand.vmem [shape: s32[128,1], index: 3, kind: input, shape index: {}]   ;;  %s1805_s2 = inlined_call_operand.vmem [shape: f32[1,128], index: 2, kind: input, shape index: {}]   ;;  %s1806_s4 = inlined_call_operand.vmem [shape: f32[128,1], index: 4, kind: output, shape index: {}]  }
   0x1   :  { %v1046_v0 = vld [vmem:[%s1802_s1] sm:$0xff]   ;;  %1044 = vset.pattern.permute.xlu0 %v1159_v1  ;;  %1045 = vset.pattern.permute.xlu1 %v1159_v1  ;;  %v1047_v2 = vld [vmem:[%s1802_s1 + $0x8] sm:$0xff]   ;;  %v1052_v7 = vld [vmem:[%s1803_s0 + $0x10] sm:$0xff]   ;;  %33 = vst.msk [vmem:[#allocation2 + $0x50] sm:$0xff] %vm22_vm1, %v1160_v14  ;;  %v1161_v48 = vmov 0.0   ;;  %v288_v54 = vlaneseq }
   0x2   :  { %1017 = vmatprep.subr.bf16.mxu0 %v1046_v0  ;;  %1037 = vmatprep.subr.bf16.mxu1 %v1046_v0  ;;  %v1048_v3 = vld [vmem:[%s1803_s0] sm:$0xff]   ;;  %v1050_v5 = vld [vmem:[%s1803_s0 + $0x8] sm:$0xff]   ;;  %v1054_v8 = vld [vmem:[%s1803_s0 + $0x30] sm:$0xff]   ;;  %23 = vst.msk [vmem:[#allocation2] sm:$0xff] %vm22_vm1, %v1160_v14 }
   0x3   :  { %1018 = vmatpush3.bf16.msra.mxu0 %v1046_v0  ;;  %1039 = vmatpush3.bf16.msra.mxu1 %v1046_v0  ;;  %v1049_v4 = vld [vmem:[%s1803_s0 + $0x20] sm:$0xff]   ;;  %v1051_v6 = vld [vmem:[%s1803_s0 + $0x28] sm:$0xff]   ;;  %v1223_v10 = vld [vmem:[%s1804_s3 + $0x10] sm:$0xff]  ;;  %24 = vst.msk [vmem:[#allocation2 + $0x8] sm:$0xff] %vm22_vm1, %v1160_v14  ;;  %v1357_v55 = vand.u32 127, %v288_v54 }
   0x4   :  { %1019 = vmatprep.subr.bf16.mxu0 %v1047_v2  ;;  %1038 = vmatprep.subr.bf16.mxu1 %v1047_v2  ;;  %v1218_v9 = vld [vmem:[%s1804_s3] sm:$0xff]  ;;  %v273_v11 = vld [vmem:[%s1804_s3 + $0x8] sm:$0xff]  ;;  %v1053_v12 = vld [vmem:[%s1803_s0 + $0x18] sm:$0xff]   ;;  %25 = vst.msk [vmem:[#allocation2 + $0x10] sm:$0xff] %vm22_vm1, %v1160_v14 }
   0x5   :  { %1021 = vmatprep.mubr.msk.bf16.mxu0 %vm150_vm0, %v1048_v3  ;;  %1029 = vmatprep.mubr.msk.bf16.mxu1 %vm150_vm0, %v1049_v4  ;;  %v1055_v13 = vld [vmem:[%s1803_s0 + $0x38] sm:$0xff]   ;;  %26 = vst.msk [vmem:[#allocation2 + $0x18] sm:$0xff] %vm22_vm1, %v1160_v14  ;;  %27 = vst.msk [vmem:[#allocation2 + $0x20] sm:$0xff] %vm22_vm1, %v1160_v14  ;;  %v988_v15 = vld [vmem:[%s1805_s2] ss:$0 sm:$0xff] }
   0x6   :  { %325 = vperm.xlu0 %1044, %v1218_v9   ;;  %331 = vperm.xlu1 %1045, %v1223_v10   ;;  %28 = vst.msk [vmem:[#allocation2 + $0x28] sm:$0xff] %vm22_vm1, %v1160_v14  ;;  %29 = vst.msk [vmem:[#allocation2 + $0x30] sm:$0xff] %vm22_vm1, %v1160_v14  ;;  %v277_v49 = vld [vmem:[%s1804_s3 + $0x28] sm:$0xff]  ;;  %v1341_v50 = vld [vmem:[%s1804_s3 + $0x18] sm:$0xff] }
   0x7   :  { %1020 = vmatpush3.bf16.msra.mxu0 %v1047_v2  ;;  %1040 = vmatpush3.bf16.msra.mxu1 %v1047_v2  ;;  %30 = vst.msk [vmem:[#allocation2 + $0x38] sm:$0xff] %vm22_vm1, %v1160_v14  ;;  %31 = vst.msk [vmem:[#allocation2 + $0x40] sm:$0xff] %vm22_vm1, %v1160_v14  ;;  %v276_v51 = vld [vmem:[%s1804_s3 + $0x20] sm:$0xff]  ;;  %v1350_v52 = vld [vmem:[%s1804_s3 + $0x30] sm:$0xff] }
   0x8   :  { %32 = vst.msk [vmem:[#allocation2 + $0x48] sm:$0xff] %vm22_vm1, %v1160_v14  ;;  %34 = vst.msk [vmem:[#allocation2 + $0x58] sm:$0xff] %vm22_vm1, %v1160_v14  ;;  %v1365_v59 = vld [vmem:[#allocation2 + $0x50] sm:$0xff] }
   0x9   :  { %35 = vst.msk [vmem:[#allocation2 + $0x60] sm:$0xff] %vm22_vm1, %v1160_v14  ;;  %36 = vst.msk [vmem:[#allocation2 + $0x68] sm:$0xff] %vm22_vm1, %v1160_v14  ;;  %v1377_v2 = vld [vmem:[#allocation2] sm:$0xff] }
   0xa   :  { %1022 = vmatmul.mubr.msk.bf16.vlgmr.msra.gmra.mrb[0].mxu0 %vm150_vm0, %v1050_v5  ;;  %1030 = vmatmul.mubr.msk.bf16.vlgmr.msra.gmra.mrb[0].mxu1 %vm150_vm0, %v1051_v6  ;;  %37 = vst.msk [vmem:[#allocation2 + $0x70] sm:$0xff] %vm22_vm1, %v1160_v14  ;;  %38 = vst.msk [vmem:[#allocation2 + $0x78] sm:$0xff] %vm22_vm1, %v1160_v14 }
   0xb   :  { %1025 = vmatprep.mubr.msk.bf16.mxu0 %vm150_vm0, %v1052_v7  ;;  %1033 = vmatprep.mubr.msk.bf16.mxu1 %vm150_vm0, %v1054_v8  ;;  %56 = vst.msk [vmem:[#allocation4 + $0x8] sm:$0xff] %vm22_vm1, %v1161_v48  ;;  %39 = vst.msk [vmem:[#allocation3] sm:$0xff] %vm22_vm1, %v1161_v48  ;;  %v1367_v60 = vld [vmem:[#allocation2 + $0x10] sm:$0xff] }
   0xc   :  { %328 = vperm.xlu0 %1044, %v273_v11   ;;  %40 = vst.msk [vmem:[#allocation3 + $0x8] sm:$0xff] %vm22_vm1, %v1161_v48  ;;  %41 = vst.msk [vmem:[#allocation3 + $0x10] sm:$0xff] %vm22_vm1, %v1161_v48  ;;  %v1394_v11 = vld [vmem:[#allocation2 + $0x8] sm:$0xff]  ;;  %v1451_v54 = vld [vmem:[#allocation2 + $0x20] sm:$0xff] }
   0xd   :  { %42 = vst.msk [vmem:[#allocation3 + $0x18] sm:$0xff] %vm22_vm1, %v1161_v48  ;;  %43 = vst.msk [vmem:[#allocation3 + $0x20] sm:$0xff] %vm22_vm1, %v1161_v48 }
   0xe   :  { %44 = vst.msk [vmem:[#allocation3 + $0x28] sm:$0xff] %vm22_vm1, %v1161_v48  ;;  %45 = vst.msk [vmem:[#allocation3 + $0x30] sm:$0xff] %vm22_vm1, %v1161_v48  ;;  %v1375_v1 = vld [vmem:[#allocation2 + $0x40] sm:$0xff] }
   0xf   :  { %46 = vst.msk [vmem:[#allocation3 + $0x38] sm:$0xff] %vm22_vm1, %v1161_v48  ;;  %47 = vst.msk [vmem:[#allocation3 + $0x40] sm:$0xff] %vm22_vm1, %v1161_v48 }
  0x10   :  { %48 = vst.msk [vmem:[#allocation3 + $0x48] sm:$0xff] %vm22_vm1, %v1161_v48  ;;  %49 = vst.msk [vmem:[#allocation3 + $0x50] sm:$0xff] %vm22_vm1, %v1161_v48 }
  0x11   :  { %50 = vst.msk [vmem:[#allocation3 + $0x58] sm:$0xff] %vm22_vm1, %v1161_v48  ;;  %51 = vst.msk [vmem:[#allocation3 + $0x60] sm:$0xff] %vm22_vm1, %v1161_v48 }
  0x12   :  { %1026 = vmatmul.mubr.msk.bf16.gmra.mrb[4].mxu0 %vm150_vm0, %v1053_v12  ;;  %1034 = vmatmul.mubr.msk.bf16.gmra.mrb[4].mxu1 %vm150_vm0, %v1055_v13  ;;  %52 = vst.msk [vmem:[#allocation3 + $0x68] sm:$0xff] %vm22_vm1, %v1161_v48  ;;  %53 = vst.msk [vmem:[#allocation3 + $0x70] sm:$0xff] %vm22_vm1, %v1161_v48  ;;  %v1396_v12 = vld [vmem:[#allocation2 + $0x18] sm:$0xff]  ;;  %v309_v13 = vld [vmem:[#allocation4 + $0x8] sm:$0xff] }
  0x13   :  { %54 = vst.msk [vmem:[#allocation3 + $0x78] sm:$0xff] %vm22_vm1, %v1161_v48  ;;  %55 = vst.msk [vmem:[#allocation4] sm:$0xff] %vm22_vm1, %v1161_v48 }
  0x14   :  { %57 = vst.msk [vmem:[#allocation4 + $0x10] sm:$0xff] %vm22_vm1, %v1161_v48  ;;  %58 = vst.msk [vmem:[#allocation4 + $0x18] sm:$0xff] %vm22_vm1, %v1161_v48 }
  0x15   :  { %59 = vst.msk [vmem:[#allocation4 + $0x20] sm:$0xff] %vm22_vm1, %v1161_v48  ;;  %60 = vst.msk [vmem:[#allocation4 + $0x28] sm:$0xff] %vm22_vm1, %v1161_v48 }
  0x16   :  { %61 = vst.msk [vmem:[#allocation4 + $0x30] sm:$0xff] %vm22_vm1, %v1161_v48  ;;  %62 = vst.msk [vmem:[#allocation4 + $0x38] sm:$0xff] %vm22_vm1, %v1161_v48 }
  0x17   :  { %63 = vst.msk [vmem:[#allocation4 + $0x40] sm:$0xff] %vm22_vm1, %v1161_v48  ;;  %64 = vst.msk [vmem:[#allocation4 + $0x48] sm:$0xff] %vm22_vm1, %v1161_v48 }
  0x18   :  { %65 = vst.msk [vmem:[#allocation4 + $0x50] sm:$0xff] %vm22_vm1, %v1161_v48  ;;  %66 = vst.msk [vmem:[#allocation4 + $0x58] sm:$0xff] %vm22_vm1, %v1161_v48 }
  0x19   :  { %67 = vst.msk [vmem:[#allocation4 + $0x60] sm:$0xff] %vm22_vm1, %v1161_v48  ;;  %68 = vst.msk [vmem:[#allocation4 + $0x68] sm:$0xff] %vm22_vm1, %v1161_v48 }
  0x1a   :  { %69 = vst.msk [vmem:[#allocation4 + $0x70] sm:$0xff] %vm22_vm1, %v1161_v48  ;;  %70 = vst.msk [vmem:[#allocation4 + $0x78] sm:$0xff] %vm22_vm1, %v1161_v48 }
  0x1b   :  { %1820 = vst [vmem:[#allocation5_spill] sm:$0xff] %v1341_v50  ;;  %1821 = vst [vmem:[#allocation6_spill] sm:$0xff] %v1350_v52 }
  0x85   :  { %v1354_v53 = vpop.permute.xlu0 %325  ;;  %v1363_v58 = vpop.permute.xlu1 %331 }
  0x86   :  { %vm372_vm5 = vcmp.eq.s32.totalorder %v1357_v55, %v1354_v53  ;;  %vm374_vm6 = vcmp.eq.s32.totalorder %v1357_v55, %v1363_v58 }
  0x8b   :  { %v329_v56 = vpop.permute.xlu0 %328 }
  0x8c   :  { %vm373_vm2 = vcmp.eq.s32.totalorder %v1357_v55, %v329_v56  ;;  %v1532_v56 = vld [vmem:[#allocation2 + $0x28] sm:$0xff] }
  0xdd   :  { %v1023_v16 = vpop.f32.mrb[0].mxu0  ;;  %v1031_v17 = vpop.f32.mrb[0].mxu1 }
  0xde   :  { %v1259_v18 = vadd.f32 %v1023_v16, %v988_v15  ;;  %v1261_v19 = vadd.f32 %v1031_v17, %v988_v15  ;;  %v241_v20 = vpop.f32.mrb[1].mxu1  ;;  %v209_v21 = vpop.f32.mrb[1].mxu0 }
  0xdf   :  { %v1032_v22 = vpop.f32.mrb[2].mxu1  ;;  %v1024_v23 = vpop.f32.mrb[2].mxu0  ;;  %v1263_v24 = vadd.f32 %v988_v15, %v209_v21  ;;  %v1267_v27 = vadd.f32 %v988_v15, %v241_v20  ;;  %v1413_v21 = vld [vmem:[#allocation2 + $0x30] sm:$0xff] }
  0xe0   :  { %505 = vmax.xlane.f32.xlu1 %v1261_v19  ;;  %v244_v25 = vpop.f32.mrb[3].mxu1  ;;  %489 = vmax.xlane.f32.xlu0 %v1259_v18  ;;  %v212_v26 = vpop.f32.mrb[3].mxu0  ;;  %v1271_v30 = vadd.f32 %v1024_v23, %v988_v15  ;;  %v1287_v43 = vadd.f32 %v1032_v22, %v988_v15  ;;  %v1415_v22 = vld [vmem:[#allocation2 + $0x58] sm:$0xff]  ;;  %v1547_v23 = vld [vmem:[#allocation2 + $0x68] sm:$0xff]  ;;  %v390_v53 = vsel %vm374_vm6, %v1259_v18, 0.0 }
  0xe1   :  { %v1273_v31 = vadd.f32 %v988_v15, %v212_v26  ;;  %v1293_v45 = vadd.f32 %v988_v15, %v244_v25  ;;  %1827 = vst [vmem:[#allocation12_spill] sm:$0xff] %v1547_v23 }
  0xe3   :  { %v389_v57 = vsel %vm373_vm2, %v1273_v31, 0.0 }
  0xe4   :  { %501 = vmax.xlane.f32.xlu1 %v1267_v27  ;;  %485 = vmax.xlane.f32.xlu0 %v1263_v24 }
  0xe5   :  { %v1027_v28 = vpop.f32.mrb[4].mxu0  ;;  %v1035_v29 = vpop.f32.mrb[4].mxu1 }
  0xe6   :  { %v225_v32 = vpop.f32.mrb[5].mxu0  ;;  %v257_v33 = vpop.f32.mrb[5].mxu1  ;;  %v1275_v36 = vadd.f32 %v1027_v28, %v988_v15  ;;  %v1289_v44 = vadd.f32 %v1035_v29, %v988_v15 }
  0xe7   :  { %v1028_v34 = vpop.f32.mrb[6].mxu0  ;;  %v1036_v35 = vpop.f32.mrb[6].mxu1  ;;  %v1297_v46 = vadd.f32 %v988_v15, %v225_v32  ;;  %v1300_v47 = vadd.f32 %v988_v15, %v257_v33  ;;  %v1432_v33 = vld [vmem:[#allocation2 + $0x70] sm:$0xff] }
  0xe8   :  { %v1277_v37 = vadd.f32 %v1028_v34, %v988_v15  ;;  %487 = vmax.xlane.f32.xlu1 %v1273_v31  ;;  %491 = vmax.xlane.f32.xlu0 %v1271_v30  ;;  %v228_v38 = vpop.f32.mrb[7].mxu0  ;;  %v1281_v39 = vadd.f32 %v1036_v35, %v988_v15  ;;  %v260_v40 = vpop.f32.mrb[7].mxu1  ;;  %v1434_v34 = vld [vmem:[#allocation2 + $0x48] sm:$0xff] }
  0xe9   :  { %v1283_v41 = vadd.f32 %v988_v15, %v228_v38  ;;  %v1285_v42 = vadd.f32 %v988_v15, %v260_v40 }
  0xec   :  { %497 = vmax.xlane.f32.xlu1 %v1275_v36  ;;  %507 = vmax.xlane.f32.xlu0 %v1287_v43 }
  0xf0   :  { %513 = vmax.xlane.f32.xlu1 %v1289_v44  ;;  %503 = vmax.xlane.f32.xlu0 %v1293_v45 }
  0xf4   :  { %493 = vmax.xlane.f32.xlu1 %v1297_v46 }
  0xf8   :  { %509 = vmax.xlane.f32.xlu1 %v1300_v47 }
 0x106   :  { %340 = vperm.xlu0 %1044, %v277_v49  }
 0x109   :  { %334 = vperm.xlu1 %1045, %v1341_v50  }
 0x10d   :  { %337 = vperm.xlu1 %1045, %v276_v51  }
 0x111   :  { %343 = vperm.xlu1 %1045, %v1350_v52  }
 0x125   :  { %499 = vmax.xlane.f32.xlu0 %v1277_v37 }
 0x129   :  { %515 = vmax.xlane.f32.xlu0 %v1281_v39 }
 0x12d   :  { %495 = vmax.xlane.f32.xlu0 %v1283_v41 }
 0x131   :  { %511 = vmax.xlane.f32.xlu0 %v1285_v42 }
 0x135   :  { %406 = vadd.xlane.f32.xlu0 %v389_v57 }
 0x16d   :  { %v506_v61 = vpop.xlane.xlu1 %505  ;;  %v490_v62 = vpop.xlane.xlu0 %489 }
 0x16e   :  { %v1370_v63 = vmax.f32 %v1365_v59, %v506_v61  ;;  %v1373_v0 = vmax.f32 %v1367_v60, %v490_v62 }
 0x170   :  { %815 = vst.msk [vmem:[#allocation2 + $0x50] sm:$0xff] %vm22_vm1, %v1370_v63  ;;  %807 = vst.msk [vmem:[#allocation2 + $0x10] sm:$0xff] %vm22_vm1, %v1373_v0  ;;  %625 = vperm.xlu1 %1045, %v1373_v0  }
 0x171   :  { %v502_v5 = vpop.xlane.xlu1 %501  ;;  %v486_v6 = vpop.xlane.xlu0 %485 }
 0x172   :  { %v1389_v7 = vmax.f32 %v1375_v1, %v502_v5  ;;  %v1392_v8 = vmax.f32 %v1377_v2, %v486_v6  ;;  %v1465_v5 = vld [vmem:[#allocation2 + $0x60] sm:$0xff] }
 0x174   :  { %813 = vst.msk [vmem:[#allocation2 + $0x40] sm:$0xff] %vm22_vm1, %v1389_v7  ;;  %805 = vst.msk [vmem:[#allocation2] sm:$0xff] %vm22_vm1, %v1392_v8  ;;  %665 = vperm.xlu1 %1045, %v1370_v63  }
 0x175   :  { %v488_v15 = vpop.xlane.xlu1 %487  ;;  %v492_v16 = vpop.xlane.xlu0 %491 }
 0x176   :  { %v1408_v17 = vmax.f32 %v1394_v11, %v488_v15  ;;  %v1411_v20 = vmax.f32 %v1396_v12, %v492_v16 }
 0x178   :  { %806 = vst.msk [vmem:[#allocation2 + $0x8] sm:$0xff] %vm22_vm1, %v1408_v17  ;;  %808 = vst.msk [vmem:[#allocation2 + $0x18] sm:$0xff] %vm22_vm1, %v1411_v20  ;;  %615 = vperm.xlu1 %1045, %v1392_v8  }
 0x179   :  { %v498_v26 = vpop.xlane.xlu1 %497  ;;  %v508_v28 = vpop.xlane.xlu0 %507 }
 0x17a   :  { %v1427_v29 = vmax.f32 %v1413_v21, %v498_v26  ;;  %v1430_v32 = vmax.f32 %v1415_v22, %v508_v28  ;;  %v287_v26 = vld [vmem:[%s1804_s3 + $0x78] sm:$0xff] }
 0x17c   :  { %811 = vst.msk [vmem:[#allocation2 + $0x30] sm:$0xff] %vm22_vm1, %v1427_v29  ;;  %816 = vst.msk [vmem:[#allocation2 + $0x58] sm:$0xff] %vm22_vm1, %v1430_v32  ;;  %655 = vperm.xlu1 %1045, %v1389_v7  }
 0x17d   :  { %v514_v40 = vpop.xlane.xlu1 %513  ;;  %v504_v48 = vpop.xlane.xlu0 %503 }
 0x17e   :  { %v1446_v49 = vmax.f32 %v1432_v33, %v514_v40  ;;  %v1449_v51 = vmax.f32 %v1434_v34, %v504_v48 }
 0x180   :  { %819 = vst.msk [vmem:[#allocation2 + $0x70] sm:$0xff] %vm22_vm1, %v1446_v49  ;;  %814 = vst.msk [vmem:[#allocation2 + $0x48] sm:$0xff] %vm22_vm1, %v1449_v51  ;;  %645 = vperm.xlu1 %1045, %v1427_v29  }
 0x181   :  { %v494_v61 = vpop.xlane.xlu1 %493 }
 0x182   :  { %v1463_v62 = vmax.f32 %v1451_v54, %v494_v61  ;;  %v1487_v61 = vld [vmem:[%s1804_s3 + $0x38] sm:$0xff] }
 0x183   :  { %1822 = vst [vmem:[#allocation7_spill] sm:$0xff] %v1487_v61 }
 0x184   :  { %809 = vst.msk [vmem:[#allocation2 + $0x20] sm:$0xff] %vm22_vm1, %v1463_v62  ;;  %635 = vperm.xlu1 %1045, %v1463_v62  }
 0x185   :  { %v510_v15 = vpop.xlane.xlu1 %509  ;;  %v341_v28 = vpop.permute.xlu0 %340 }
 0x186   :  { %v1473_v16 = vmax.f32 %v1465_v5, %v510_v15  ;;  %vm377_vm4 = vcmp.eq.s32.totalorder %v1357_v55, %v341_v28  ;;  %v283_v28 = vld [vmem:[%s1804_s3 + $0x58] sm:$0xff] }
 0x187   :  { %v393_v15 = vsel %vm377_vm4, %v1283_v41, 0.0  ;;  %vm904_vm4 = vcmp.ne.s32.totalorder %v1218_v9, 4294967196 }
 0x188   :  { %817 = vst.msk [vmem:[#allocation2 + $0x60] sm:$0xff] %vm22_vm1, %v1473_v16  ;;  %675 = vperm.xlu1 %1045, %v1473_v16  }
 0x189   :  { %v335_v40 = vpop.permute.xlu1 %334 }
 0x18a   :  { %vm375_vm3 = vcmp.eq.s32.totalorder %v1357_v55, %v335_v40  ;;  %v281_v40 = vld [vmem:[%s1804_s3 + $0x48] sm:$0xff] }
 0x18b   :  { %v391_v48 = vsel %vm375_vm3, %v1271_v30, 0.0  ;;  %vm906_vm3 = vcmp.ne.s32.totalorder %v1223_v10, 4294967196  ;;  %v1841_v10 = vsub.f32 %v1465_v5, %v1473_v16 }
 0x18c   :  { %410 = vadd.xlane.f32.xlu0 %v391_v48  ;;  %685 = vperm.xlu1 %1045, %v1446_v49   ;;  %v285_v48 = vld [vmem:[%s1804_s3 + $0x68] sm:$0xff] }
 0x190   :  { %346 = vperm.xlu1 %1045, %v1487_v61   ;;  %414 = vadd.xlane.f32.xlu0 %v393_v15  ;;  %v1506_v15 = vld [vmem:[#allocation2 + $0x38] sm:$0xff] }
 0x194   :  { %352 = vperm.xlu1 %1045, %v281_v40  }
 0x198   :  { %358 = vperm.xlu1 %1045, %v283_v28  }
 0x19c   :  { %364 = vperm.xlu1 %1045, %v285_v48   ;;  %v1515_v48 = vld [vmem:[%s1804_s3 + $0x40] sm:$0xff] }
 0x19d   :  { %1823 = vst [vmem:[#allocation8_spill] sm:$0xff] %v1515_v48 }
 0x1a0   :  { %370 = vperm.xlu1 %1045, %v287_v26   ;;  %v1517_v26 = vld [vmem:[#allocation2 + $0x78] sm:$0xff] }
 0x1a6   :  { %620 = vperm.xlu0 %1044, %v1408_v17  }
 0x1aa   :  { %630 = vperm.xlu0 %1044, %v1411_v20  }
 0x1ae   :  { %660 = vperm.xlu0 %1044, %v1449_v51  }
 0x1b2   :  { %670 = vperm.xlu0 %1044, %v1430_v32   ;;  %v500_v40 = vpop.xlane.xlu0 %499 }
 0x1b3   :  { %v1510_v28 = vmax.f32 %v1506_v15, %v500_v40  ;;  %v1530_v40 = vld [vmem:[%s1804_s3 + $0x50] sm:$0xff] }
 0x1b4   :  { %1824 = vst [vmem:[#allocation9_spill] sm:$0xff] %v1530_v40 }
 0x1b5   :  { %812 = vst.msk [vmem:[#allocation2 + $0x38] sm:$0xff] %vm22_vm1, %v1510_v28 }
 0x1b6   :  { %349 = vperm.xlu0 %1044, %v1515_v48   ;;  %v516_v6 = vpop.xlane.xlu0 %515 }
 0x1b7   :  { %v1525_v38 = vmax.f32 %v1517_v26, %v516_v6  ;;  %v1545_v6 = vld [vmem:[%s1804_s3 + $0x60] sm:$0xff] }
 0x1b8   :  { %1826 = vst [vmem:[#allocation11_spill] sm:$0xff] %v1545_v6 }
 0x1b9   :  { %820 = vst.msk [vmem:[#allocation2 + $0x78] sm:$0xff] %vm22_vm1, %v1525_v38 }
 0x1ba   :  { %355 = vperm.xlu0 %1044, %v1530_v40   ;;  %v496_v57 = vpop.xlane.xlu0 %495 }
 0x1bb   :  { %v1540_v25 = vmax.f32 %v1532_v56, %v496_v57  ;;  %v1560_v57 = vld [vmem:[%s1804_s3 + $0x70] sm:$0xff] }
 0x1bc   :  { %1829 = vst [vmem:[#allocation14_spill] sm:$0xff] %v1560_v57 }
 0x1bd   :  { %1825 = vst [vmem:[#allocation10_spill] sm:$0xff] %v1540_v25  ;;  %810 = vst.msk [vmem:[#allocation2 + $0x28] sm:$0xff] %vm22_vm1, %v1540_v25 }
 0x1be   :  { %361 = vperm.xlu0 %1044, %v1545_v6   ;;  %v512_v35 = vpop.xlane.xlu0 %511  ;;  %v388_v6 = vsel %vm372_vm5, %v1263_v24, 0.0 }
 0x1bf   :  { %v1555_v4 = vmax.f32 %v1547_v23, %v512_v35  ;;  %v338_v35 = vpop.permute.xlu1 %337 }
 0x1c0   :  { %vm376_vm7 = vcmp.eq.s32.totalorder %v1357_v55, %v338_v35 }
 0x1c1   :  { %1828 = vst [vmem:[#allocation13_spill] sm:$0xff] %v1555_v4  ;;  %818 = vst.msk [vmem:[#allocation2 + $0x68] sm:$0xff] %vm22_vm1, %v1555_v4 }
 0x1c2   :  { %367 = vperm.xlu0 %1044, %v1560_v57   ;;  %v407_v3 = vpop.xlane.xlu0 %406 }
 0x1c3   :  { %v437_v61 = vadd.f32 %v407_v3, %v309_v13  ;;  %v344_v14 = vpop.permute.xlu1 %343  ;;  %v392_v3 = vsel %vm376_vm7, %v1297_v46, 0.0 }
 0x1c4   :  { %404 = vadd.xlane.f32.xlu1 %v388_v6  ;;  %vm378_vm8 = vcmp.eq.s32.totalorder %v1357_v55, %v344_v14 }
 0x1c5   :  { %454 = vst.msk [vmem:[#allocation4 + $0x8] sm:$0xff] %vm22_vm1, %v437_v61  ;;  %v394_v58 = vsel %vm378_vm8, %v1275_v36, 0.0 }
 0x1c6   :  { %650 = vperm.xlu0 %1044, %v1510_v28  }
 0x1c8   :  { %408 = vadd.xlane.f32.xlu1 %v390_v53 }
 0x1ca   :  { %690 = vperm.xlu0 %1044, %v1525_v38  }
 0x1cc   :  { %412 = vadd.xlane.f32.xlu1 %v392_v3 }
 0x1ce   :  { %640 = vperm.xlu0 %1044, %v1540_v25  }
 0x1d0   :  { %416 = vadd.xlane.f32.xlu1 %v394_v58 }
 0x1d2   :  { %680 = vperm.xlu0 %1044, %v1555_v4  }
 0x1ef   :  { %v626_v13 = vpop.permute.xlu1 %625 }
 0x1f0   :  { %v695_v52 = vsub.f32 %v1259_v18, %v626_v13  ;;  %v311_v18 = vld [vmem:[#allocation4 + $0x18] sm:$0xff] }
 0x1f2   :  { %v713_v58 = vmul.f32 1.442695, %v695_v52 }
 0x1f3   :  { %v666_v61 = vpop.permute.xlu1 %665 }
 0x1f4   :  { %v703_v6 = vsub.f32 %v1261_v19, %v666_v61 }
 0x1f6   :  { %v729_v35 = vmul.f32 1.442695, %v703_v6 }
 0x1f7   :  { %v616_v53 = vpop.permute.xlu1 %615 }
 0x1f8   :  { %1056 = vpow2.f32 %v729_v35  ;;  %v693_v4 = vsub.f32 %v1263_v24, %v616_v53  ;;  %v313_v24 = vld [vmem:[#allocation4 + $0x28] sm:$0xff] }
 0x1fa   :  { %v709_v61 = vmul.f32 1.442695, %v693_v4 }
 0x1fb   :  { %v656_v57 = vpop.permute.xlu1 %655 }
 0x1fc   :  { %v701_v40 = vsub.f32 %v1267_v27, %v656_v57 }
 0x1fe   :  { %v725_v48 = vmul.f32 1.442695, %v701_v40 }
 0x1ff   :  { %v646_v14 = vpop.permute.xlu1 %645 }
 0x200   :  { %1058 = vpow2.f32 %v725_v48 }
 0x201   :  { %1060 = vpow2.f32 %v713_v58 }
 0x202   :  { %v1057_v3 = vpop.eup %1056  ;;  %1062 = vpow2.f32 %v709_v61 }
 0x203   :  { %v636_v50 = vpop.permute.xlu1 %635  ;;  %761 = vadd.xlane.f32.xlu1 %v1057_v3 }
 0x207   :  { %v676_v23 = vpop.permute.xlu1 %675 }
 0x20a   :  { %v1059_v25 = vpop.eup %1058 }
 0x20b   :  { %v686_v6 = vpop.permute.xlu1 %685  ;;  %757 = vadd.xlane.f32.xlu1 %v1059_v25  ;;  %v1061_v40 = vpop.eup %1060  ;;  %v699_v25 = vsub.f32 %v1275_v36, %v646_v14  ;;  %v705_v36 = vsub.f32 %v1300_v47, %v676_v23 }
 0x20c   :  { %v1063_v57 = vpop.eup %1062 }
 0x20f   :  { %v347_v35 = vpop.permute.xlu1 %346 }
 0x210   :  { %vm379_vm9 = vcmp.eq.s32.totalorder %v1357_v55, %v347_v35  ;;  %v721_v35 = vmul.f32 1.442695, %v699_v25 }
 0x211   :  { %v395_v48 = vsel %vm379_vm9, %v1277_v37, 0.0 }
 0x212   :  { %418 = vadd.xlane.f32.xlu0 %v395_v48 }
 0x213   :  { %v1598_v23 = vpop.permute.xlu1 %352 }
 0x214   :  { %vm381_vm14 = vcmp.eq.s32.totalorder %v1357_v55, %v1598_v23 }
 0x216   :  { %745 = vadd.xlane.f32.xlu0 %v1061_v40  ;;  %v707_v40 = vsub.f32 %v1289_v44, %v686_v6 }
 0x219   :  { %v411_v52 = vpop.xlane.xlu0 %410 }
 0x21a   :  { %v439_v13 = vadd.f32 %v411_v52, %v311_v18  ;;  %741 = vadd.xlane.f32.xlu0 %v1063_v57  ;;  %v697_v52 = vsub.f32 %v1297_v46, %v636_v50 }
 0x21c   :  { %456 = vst.msk [vmem:[#allocation4 + $0x18] sm:$0xff] %vm22_vm1, %v439_v13 }
 0x21d   :  { %v415_v4 = vpop.xlane.xlu0 %414 }
 0x21e   :  { %v441_v53 = vadd.f32 %v415_v4, %v313_v24  ;;  %v737_v24 = vmul.f32 1.442695, %v707_v40  ;;  %v717_v4 = vmul.f32 1.442695, %v697_v52 }
 0x220   :  { %458 = vst.msk [vmem:[#allocation4 + $0x28] sm:$0xff] %vm22_vm1, %v441_v53 }
 0x225   :  { %v621_v3 = vpop.permute.xlu0 %620 }
 0x226   :  { %v694_v58 = vsub.f32 %v1273_v31, %v621_v3 }
 0x228   :  { %v711_v61 = vmul.f32 1.442695, %v694_v58 }
 0x229   :  { %v631_v48 = vpop.permute.xlu0 %630 }
 0x22a   :  { %1064 = vpow2.f32 %v711_v61  ;;  %v696_v18 = vsub.f32 %v1271_v30, %v631_v48  ;;  %v733_v30 = vmul.f32 1.442695, %v705_v36 }
 0x22b   :  { %1066 = vpow2.f32 %v721_v35 }
 0x22c   :  { %v715_v57 = vmul.f32 1.442695, %v696_v18 }
 0x22d   :  { %v661_v13 = vpop.permute.xlu0 %660 }
 0x22e   :  { %1068 = vpow2.f32 %v715_v57  ;;  %v702_v31 = vsub.f32 %v1293_v45, %v661_v13  ;;  %v1600_v57 = vpop.permute.xlu1 %358 }
 0x22f   :  { %1070 = vpow2.f32 %v737_v24  ;;  %vm383_vm15 = vcmp.eq.s32.totalorder %v1357_v55, %v1600_v57  ;;  %v1831_v57 = vsub.f32 %v1375_v1, %v1389_v7 }
 0x230   :  { %1072 = vpow2.f32 %v717_v4  ;;  %v727_v58 = vmul.f32 1.442695, %v702_v31 }
 0x231   :  { %v671_v14 = vpop.permute.xlu0 %670 }
 0x232   :  { %v704_v53 = vsub.f32 %v1287_v43, %v671_v14  ;;  %v365_v14 = vpop.permute.xlu1 %364 }
 0x233   :  { %vm385_vm0 = vcmp.eq.s32.totalorder %v1357_v55, %v365_v14 }
 0x234   :  { %v1065_v6 = vpop.eup %1064  ;;  %v731_v25 = vmul.f32 1.442695, %v704_v53 }
 0x235   :  { %v350_v3 = vpop.permute.xlu0 %349  ;;  %743 = vadd.xlane.f32.xlu1 %v1065_v6  ;;  %v1067_v46 = vpop.eup %1066 }
 0x236   :  { %1074 = vpow2.f32 %v731_v25  ;;  %vm380_vm10 = vcmp.eq.s32.totalorder %v1357_v55, %v350_v3  ;;  %v371_v3 = vpop.permute.xlu1 %370 }
 0x237   :  { %1076 = vpow2.f32 %v733_v30  ;;  %v396_v53 = vsel %vm380_vm10, %v1267_v27, 0.0  ;;  %vm387_vm2 = vcmp.eq.s32.totalorder %v1357_v55, %v371_v3 }
 0x238   :  { %v1069_v50 = vpop.eup %1068  ;;  %1078 = vpow2.f32 %v727_v58 }
 0x239   :  { %747 = vadd.xlane.f32.xlu0 %v1069_v50  ;;  %v356_v61 = vpop.permute.xlu0 %355  ;;  %753 = vadd.xlane.f32.xlu1 %v1067_v46  ;;  %v1071_v35 = vpop.eup %1070  ;;  %v308_v50 = vld [vmem:[#allocation4] sm:$0xff] }
 0x23a   :  { %v1073_v40 = vpop.eup %1072  ;;  %vm382_vm11 = vcmp.eq.s32.totalorder %v1357_v55, %v356_v61 }
 0x23b   :  { %v398_v58 = vsel %vm382_vm11, %v1261_v19, 0.0 }
 0x23d   :  { %v362_v48 = vpop.permute.xlu0 %361  ;;  %769 = vadd.xlane.f32.xlu1 %v1071_v35 }
 0x23e   :  { %vm384_vm12 = vcmp.eq.s32.totalorder %v1357_v55, %v362_v48 }
 0x23f   :  { %v400_v61 = vsel %vm384_vm12, %v1300_v47, 0.0 }
 0x240   :  { %v1075_v18 = vpop.eup %1074 }
 0x241   :  { %763 = vadd.xlane.f32.xlu0 %v1075_v18  ;;  %v368_v52 = vpop.permute.xlu0 %367  ;;  %749 = vadd.xlane.f32.xlu1 %v1073_v40  ;;  %v1077_v13 = vpop.eup %1076 }
 0x242   :  { %v1079_v24 = vpop.eup %1078  ;;  %vm386_vm13 = vcmp.eq.s32.totalorder %v1357_v55, %v368_v52  ;;  %v312_v52 = vld [vmem:[#allocation4 + $0x20] sm:$0xff]  ;;  %v1832_v55 = vsub.f32 %v1367_v60, %v1373_v0  ;;  %v583_v0 = vld [vmem:[#allocation3 + $0x10] sm:$0xff] }
 0x244   :  { %v553_v3 = vmul.f32 1.442695, %v1832_v55 }
 0x245   :  { %759 = vadd.xlane.f32.xlu0 %v1079_v24  ;;  %v651_v4 = vpop.permute.xlu0 %650  ;;  %765 = vadd.xlane.f32.xlu1 %v1077_v13  ;;  %v310_v13 = vld [vmem:[#allocation4 + $0x10] sm:$0xff] }
 0x246   :  { %v700_v36 = vsub.f32 %v1277_v37, %v651_v4 }
 0x248   :  { %v723_v31 = vmul.f32 1.442695, %v700_v36 }
 0x249   :  { %v691_v6 = vpop.permute.xlu0 %690  ;;  %420 = vadd.xlane.f32.xlu1 %v396_v53 }
 0x24a   :  { %1080 = vpow2.f32 %v723_v31  ;;  %v708_v25 = vsub.f32 %v1281_v39, %v691_v6  ;;  %v314_v6 = vld [vmem:[#allocation4 + $0x30] sm:$0xff] }
 0x24c   :  { %v739_v30 = vmul.f32 1.442695, %v708_v25 }
 0x24d   :  { %v641_v46 = vpop.permute.xlu0 %640  ;;  %424 = vadd.xlane.f32.xlu1 %v398_v58 }
 0x24e   :  { %1082 = vpow2.f32 %v739_v30  ;;  %v698_v37 = vsub.f32 %v1283_v41, %v641_v46  ;;  %v402_v41 = vsel %vm386_vm13, %v1289_v44, 0.0  ;;  %v397_v46 = vsel %vm381_vm14, %v1293_v45, 0.0 }
 0x24f   :  { %v1830_v45 = vsub.f32 %v1365_v59, %v1370_v63  ;;  %v589_v59 = vld [vmem:[#allocation3 + $0x40] sm:$0xff]  ;;  %v1833_v63 = vsub.f32 %v1377_v2, %v1392_v8 }
 0x250   :  { %v719_v27 = vmul.f32 1.442695, %v698_v37  ;;  %v399_v37 = vsel %vm383_vm15, %v1287_v43, 0.0  ;;  %v565_v43 = vmul.f32 1.442695, %v1831_v57 }
 0x251   :  { %v681_v35 = vpop.permute.xlu0 %680  ;;  %428 = vadd.xlane.f32.xlu1 %v400_v61  ;;  %v405_v40 = vpop.xlane.xlu1 %404  ;;  %v569_v23 = vmul.f32 1.442695, %v1830_v45  ;;  %v591_v61 = vld [vmem:[#allocation3 + $0x50] sm:$0xff]  ;;  %v549_v1 = vmul.f32 1.442695, %v1833_v63 }
 0x252   :  { %1084 = vpow2.f32 %v719_v27  ;;  %v706_v19 = vsub.f32 %v1285_v42, %v681_v35  ;;  %v436_v18 = vadd.f32 %v405_v40, %v308_v50  ;;  %v401_v50 = vsel %vm385_vm0, %v1285_v42, 0.0  ;;  %v587_v63 = vld [vmem:[#allocation3 + $0x30] sm:$0xff] }
 0x253   :  { %v403_v27 = vsel %vm387_vm2, %v1281_v39, 0.0 }
 0x254   :  { %v1081_v48 = vpop.eup %1080  ;;  %v735_v24 = vmul.f32 1.442695, %v706_v19  ;;  %453 = vst.msk [vmem:[#allocation4] sm:$0xff] %vm22_vm1, %v436_v18 }
 0x255   :  { %755 = vadd.xlane.f32.xlu0 %v1081_v48  ;;  %432 = vadd.xlane.f32.xlu1 %v402_v41  ;;  %v409_v4 = vpop.xlane.xlu1 %408 }
 0x256   :  { %1086 = vpow2.f32 %v735_v24  ;;  %v438_v47 = vadd.f32 %v409_v4, %v310_v13  ;;  %v315_v13 = vld [vmem:[#allocation4 + $0x38] sm:$0xff] }
 0x257   :  { %1088 = vpow2.f32 %v569_v23  ;;  %v1838_v23 = vsub.f32 %v1415_v22, %v1430_v32  ;;  %v1840_v22 = vsub.f32 %v1434_v34, %v1449_v51 }
 0x258   :  { %v1083_v36 = vpop.eup %1082  ;;  %455 = vst.msk [vmem:[#allocation4 + $0x10] sm:$0xff] %vm22_vm1, %v438_v47  ;;  %1090 = vpow2.f32 %v565_v43 }
 0x259   :  { %771 = vadd.xlane.f32.xlu0 %v1083_v36  ;;  %v413_v31 = vpop.xlane.xlu1 %412  ;;  %1092 = vpow2.f32 %v553_v3  ;;  %v571_v57 = vmul.f32 1.442695, %v1838_v23  ;;  %v567_v32 = vmul.f32 1.442695, %v1840_v22 }
 0x25a   :  { %v440_v53 = vadd.f32 %v413_v31, %v312_v52  ;;  %1094 = vpow2.f32 %v549_v1  ;;  %v581_v52 = vld [vmem:[#allocation3] sm:$0xff] }
 0x25c   :  { %v1085_v25 = vpop.eup %1084  ;;  %457 = vst.msk [vmem:[#allocation4 + $0x20] sm:$0xff] %vm22_vm1, %v440_v53 }
 0x25d   :  { %751 = vadd.xlane.f32.xlu0 %v1085_v25  ;;  %v417_v30 = vpop.xlane.xlu1 %416 }
 0x25e   :  { %v442_v58 = vadd.f32 %v417_v30, %v314_v6  ;;  %v1834_v6 = vsub.f32 %v1394_v11, %v1408_v17  ;;  %v826_v17 = vld [vmem:[#allocation2 + $0x10] sm:$0xff] }
 0x25f   :  { %v922_v43 = vld [vmem:[#allocation4 + $0x10] sm:$0xff] }
 0x260   :  { %v1087_v44 = vpop.eup %1086  ;;  %459 = vst.msk [vmem:[#allocation4 + $0x30] sm:$0xff] %vm22_vm1, %v442_v58  ;;  %v551_v25 = vmul.f32 1.442695, %v1834_v6  ;;  %v1835_v58 = vsub.f32 %v1396_v12, %v1411_v20 }
 0x261   :  { %767 = vadd.xlane.f32.xlu0 %v1087_v44  ;;  %v1089_v14 = vpop.eup %1088 }
 0x262   :  { %v607_v35 = vmul.f32 %v1089_v14, %v591_v61  ;;  %v1091_v40 = vpop.eup %1090  ;;  %v555_v44 = vmul.f32 1.442695, %v1835_v58 }
 0x263   :  { %v605_v7 = vmul.f32 %v1091_v40, %v589_v59  ;;  %v1093_v48 = vpop.eup %1092  ;;  %v584_v59 = vld [vmem:[#allocation3 + $0x18] sm:$0xff] }
 0x264   :  { %v599_v41 = vmul.f32 %v1093_v48, %v583_v0  ;;  %v1095_v4 = vpop.eup %1094 }
 0x265   :  { %422 = vadd.xlane.f32.xlu0 %v397_v46  ;;  %v597_v2 = vmul.f32 %v1095_v4, %v581_v52  ;;  %v1836_v46 = vsub.f32 %v1413_v21, %v1427_v29  ;;  %v1839_v21 = vsub.f32 %v1451_v54, %v1463_v62  ;;  %v573_v54 = vmul.f32 1.442695, %v1841_v10  ;;  %v920_v62 = vld [vmem:[#allocation4] sm:$0xff] }
 0x266   :  { %v585_v52 = vld [vmem:[#allocation3 + $0x20] sm:$0xff] }
 0x267   :  { %v557_v29 = vmul.f32 1.442695, %v1839_v21 }
 0x269   :  { %426 = vadd.xlane.f32.xlu0 %v399_v37  ;;  %v561_v37 = vmul.f32 1.442695, %v1836_v46  ;;  %v590_v46 = vld [vmem:[#allocation3 + $0x48] sm:$0xff] }
 0x26d   :  { %430 = vadd.xlane.f32.xlu0 %v401_v50 }
 0x271   :  { %434 = vadd.xlane.f32.xlu0 %v403_v27  ;;  %v1837_v27 = vsub.f32 %v1432_v33, %v1446_v49  ;;  %v824_v49 = vld [vmem:[#allocation2] sm:$0xff] }
 0x273   :  { %v577_v45 = vmul.f32 1.442695, %v1837_v27 }
 0x290   :  { %v762_v42 = vpop.xlane.xlu1 %761 }
 0x291   :  { %v783_v39 = vadd.f32 %v762_v42, %v607_v35  ;;  %v582_v35 = vld [vmem:[#allocation3 + $0x8] sm:$0xff] }
 0x293   :  { %799 = vst.msk [vmem:[#allocation3 + $0x50] sm:$0xff] %vm22_vm1, %v783_v39 }
 0x298   :  { %v758_v19 = vpop.xlane.xlu1 %757 }
 0x299   :  { %v781_v18 = vadd.f32 %v758_v19, %v605_v7 }
 0x29b   :  { %797 = vst.msk [vmem:[#allocation3 + $0x40] sm:$0xff] %vm22_vm1, %v781_v18 }
 0x29f   :  { %v419_v60 = vpop.xlane.xlu0 %418 }
 0x2a0   :  { %v443_v24 = vadd.f32 %v419_v60, %v315_v13  ;;  %v595_v13 = vld [vmem:[#allocation3 + $0x70] sm:$0xff] }
 0x2a2   :  { %460 = vst.msk [vmem:[#allocation4 + $0x38] sm:$0xff] %vm22_vm1, %v443_v24 }
 0x2a3   :  { %v746_v47 = vpop.xlane.xlu0 %745 }
 0x2a4   :  { %v775_v36 = vadd.f32 %v746_v47, %v599_v41  ;;  %v592_v47 = vld [vmem:[#allocation3 + $0x58] sm:$0xff] }
 0x2a6   :  { %791 = vst.msk [vmem:[#allocation3 + $0x10] sm:$0xff] %vm22_vm1, %v775_v36  ;;  %v848_v36 = vld [vmem:[#allocation3 + $0x40] sm:$0xff] }
 0x2a7   :  { %v742_v8 = vpop.xlane.xlu0 %741 }
 0x2a8   :  { %v773_v31 = vadd.f32 %v742_v8, %v597_v2 }
 0x2aa   :  { %789 = vst.msk [vmem:[#allocation3] sm:$0xff] %vm22_vm1, %v773_v31 }
 0x2ad   :  { %v842_v53 = vld [vmem:[#allocation3 + $0x10] sm:$0xff] }
 0x2ae   :  { %1096 = vlog2.f32 %v842_v53  ;;  %v850_v53 = vld [vmem:[#allocation3 + $0x50] sm:$0xff] }
 0x2b1   :  { %v840_v30 = vld [vmem:[#allocation3] sm:$0xff] }
 0x2b2   :  { %1098 = vlog2.f32 %v840_v30 }
 0x2b3   :  { %1100 = vpow2.f32 %v551_v25 }
 0x2b4   :  { %1102 = vpow2.f32 %v555_v44 }
 0x2b5   :  { %1104 = vpow2.f32 %v561_v37  ;;  %v593_v37 = vld [vmem:[#allocation3 + $0x60] sm:$0xff] }
 0x2b6   :  { %1106 = vpow2.f32 %v577_v45  ;;  %v1842_v45 = vsub.f32 %v1506_v15, %v1510_v28  ;;  %v1843_v15 = vsub.f32 %v1517_v26, %v1525_v38  ;;  %v825_v38 = vld [vmem:[#allocation2 + $0x8] sm:$0xff] }
 0x2b7   :  { %1108 = vpow2.f32 %v571_v57 }
 0x2b8   :  { %v1097_v50 = vpop.eup %1096  ;;  %1110 = vpow2.f32 %v557_v29  ;;  %v579_v28 = vmul.f32 1.442695, %v1843_v15 }
 0x2b9   :  { %v861_v11 = vmul.f32 0.6931472, %v1097_v50  ;;  %1112 = vpow2.f32 %v567_v32  ;;  %v1844_v32 = vld [vmem:[#allocation10_spill] sm:$0xff] }
 0x2ba   :  { %1114 = vpow2.f32 %v573_v54 }
 0x2bb   :  { %v890_v12 = vadd.f32 %v861_v11, %v826_v17  ;;  %v563_v11 = vmul.f32 1.442695, %v1842_v45 }
 0x2bc   :  { %v1099_v20 = vpop.eup %1098 }
 0x2bd   :  { %v938_v14 = vsub.f32 %v890_v12, %v922_v43  ;;  %v857_v61 = vmul.f32 0.6931472, %v1099_v20  ;;  %v1101_v33 = vpop.eup %1100 }
 0x2be   :  { %v1103_v3 = vpop.eup %1102  ;;  %v598_v40 = vmul.f32 %v1101_v33, %v582_v35 }
 0x2bf   :  { %v954_v42 = vsel %vm906_vm3, %v938_v14, 0.0  ;;  %v888_v55 = vadd.f32 %v857_v61, %v824_v49  ;;  %v1105_v34 = vpop.eup %1104  ;;  %v600_v5 = vmul.f32 %v1103_v3, %v584_v59  ;;  %v316_v14 = vld [vmem:[#allocation4 + $0x40] sm:$0xff] }
 0x2c0   :  { %970 = vst.msk [vmem:[%s1806_s4 + $0x10] sm:$0xff] %vm22_vm1, %v954_v42  ;;  %v603_v16 = vmul.f32 %v1105_v34, %v587_v63  ;;  %v1107_v7 = vpop.eup %1106  ;;  %v1845_v42 = vsub.f32 %v1532_v56, %v1844_v32  ;;  %v1152_v34 = vld [vmem:[%s1804_s3 + $0x8] sm:$0xff] }
 0x2c1   :  { %v936_v39 = vsub.f32 %v888_v55, %v920_v62  ;;  %v1109_v0 = vpop.eup %1108  ;;  %v611_v24 = vmul.f32 %v1107_v7, %v595_v13  ;;  %v318_v62 = vld [vmem:[#allocation4 + $0x50] sm:$0xff]  ;;  %vm905_vm5 = vcmp.ne.s32.totalorder %v1152_v34, 4294967196  ;;  %v320_v13 = vld [vmem:[#allocation4 + $0x60] sm:$0xff] }
 0x2c2   :  { %v744_v51 = vpop.xlane.xlu1 %743  ;;  %v1111_v41 = vpop.eup %1110  ;;  %v608_v6 = vmul.f32 %v1109_v0, %v592_v47  ;;  %v559_v55 = vmul.f32 1.442695, %v1845_v42 }
 0x2c3   :  { %v952_v9 = vsel %vm904_vm4, %v936_v39, 0.0  ;;  %v774_v1 = vadd.f32 %v744_v51, %v598_v40  ;;  %v1113_v31 = vpop.eup %1112  ;;  %v601_v25 = vmul.f32 %v1111_v41, %v585_v52  ;;  %v921_v51 = vld [vmem:[#allocation4 + $0x8] sm:$0xff]  ;;  %v830_v41 = vld [vmem:[#allocation2 + $0x30] sm:$0xff] }
 0x2c4   :  { %968 = vst.msk [vmem:[%s1806_s4] sm:$0xff] %vm22_vm1, %v952_v9  ;;  %v1115_v30 = vpop.eup %1114  ;;  %v606_v57 = vmul.f32 %v1113_v31, %v590_v46  ;;  %v1846_v9 = vld [vmem:[#allocation12_spill] sm:$0xff] }
 0x2c5   :  { %790 = vst.msk [vmem:[#allocation3 + $0x8] sm:$0xff] %vm22_vm1, %v774_v1  ;;  %v609_v12 = vmul.f32 %v1115_v30, %v593_v37  ;;  %v1847_v1 = vld [vmem:[#allocation13_spill] sm:$0xff]  ;;  %v923_v31 = vld [vmem:[#allocation4 + $0x18] sm:$0xff]  ;;  %v1850_v30 = vld [vmem:[#allocation6_spill] sm:$0xff] }
 0x2c6   :  { %v748_v19 = vpop.xlane.xlu0 %747  ;;  %v754_v18 = vpop.xlane.xlu1 %753  ;;  %vm910_vm7 = vcmp.ne.s32.totalorder %v1850_v30, 4294967196  ;;  %v317_v30 = vld [vmem:[#allocation4 + $0x48] sm:$0xff] }
 0x2c7   :  { %v776_v48 = vadd.f32 %v748_v19, %v600_v5  ;;  %v779_v60 = vadd.f32 %v754_v18, %v603_v16  ;;  %v1848_v5 = vsub.f32 %v1846_v9, %v1847_v1 }
 0x2c9   :  { %792 = vst.msk [vmem:[#allocation3 + $0x18] sm:$0xff] %vm22_vm1, %v776_v48  ;;  %795 = vst.msk [vmem:[#allocation3 + $0x30] sm:$0xff] %vm22_vm1, %v779_v60  ;;  %v575_v16 = vmul.f32 1.442695, %v1848_v5  ;;  %v827_v48 = vld [vmem:[#allocation2 + $0x18] sm:$0xff]  ;;  %v838_v5 = vld [vmem:[#allocation2 + $0x70] sm:$0xff] }
 0x2ca   :  { %v770_v4 = vpop.xlane.xlu1 %769 }
 0x2cb   :  { %v787_v2 = vadd.f32 %v770_v4, %v611_v24  ;;  %v832_v24 = vld [vmem:[#allocation2 + $0x40] sm:$0xff] }
 0x2cc   :  { %v841_v8 = vld [vmem:[#allocation3 + $0x8] sm:$0xff] }
 0x2cd   :  { %1116 = vlog2.f32 %v841_v8  ;;  %803 = vst.msk [vmem:[#allocation3 + $0x70] sm:$0xff] %vm22_vm1, %v787_v2  ;;  %v588_v2 = vld [vmem:[#allocation3 + $0x38] sm:$0xff]  ;;  %v1849_v8 = vld [vmem:[#allocation5_spill] sm:$0xff] }
 0x2ce   :  { %1118 = vlog2.f32 %v848_v36  ;;  %v764_v58 = vpop.xlane.xlu0 %763  ;;  %v750_v44 = vpop.xlane.xlu1 %749  ;;  %vm907_vm6 = vcmp.ne.s32.totalorder %v1849_v8, 4294967196 }
 0x2cf   :  { %v784_v50 = vadd.f32 %v764_v58, %v608_v6  ;;  %v777_v27 = vadd.f32 %v750_v44, %v601_v25  ;;  %1120 = vlog2.f32 %v850_v53  ;;  %v1851_v58 = vld [vmem:[#allocation8_spill] sm:$0xff]  ;;  %v926_v44 = vld [vmem:[#allocation4 + $0x30] sm:$0xff] }
 0x2d0   :  { %v843_v17 = vld [vmem:[#allocation3 + $0x18] sm:$0xff]  ;;  %v846_v23 = vld [vmem:[#allocation3 + $0x30] sm:$0xff]  ;;  %vm912_vm8 = vcmp.ne.s32.totalorder %v1851_v58, 4294967196 }
 0x2d1   :  { %1122 = vlog2.f32 %v843_v17  ;;  %800 = vst.msk [vmem:[#allocation3 + $0x58] sm:$0xff] %vm22_vm1, %v784_v50  ;;  %793 = vst.msk [vmem:[#allocation3 + $0x20] sm:$0xff] %vm22_vm1, %v777_v27  ;;  %v322_v50 = vld [vmem:[#allocation4 + $0x70] sm:$0xff] }
 0x2d2   :  { %1124 = vlog2.f32 %v846_v23  ;;  %v760_v20 = vpop.xlane.xlu0 %759  ;;  %v766_v21 = vpop.xlane.xlu1 %765  ;;  %v834_v27 = vld [vmem:[#allocation2 + $0x50] sm:$0xff] }
 0x2d3   :  { %v782_v29 = vadd.f32 %v760_v20, %v606_v57  ;;  %v785_v43 = vadd.f32 %v766_v21, %v609_v12  ;;  %1126 = vpow2.f32 %v563_v11 }
 0x2d4   :  { %v854_v61 = vld [vmem:[#allocation3 + $0x70] sm:$0xff]  ;;  %1128 = vpow2.f32 %v579_v28 }
 0x2d5   :  { %798 = vst.msk [vmem:[#allocation3 + $0x48] sm:$0xff] %vm22_vm1, %v782_v29  ;;  %801 = vst.msk [vmem:[#allocation3 + $0x60] sm:$0xff] %vm22_vm1, %v785_v43  ;;  %1130 = vlog2.f32 %v854_v61  ;;  %v596_v29 = vld [vmem:[#allocation3 + $0x78] sm:$0xff] }
 0x2d6   :  { %v421_v33 = vpop.xlane.xlu1 %420 }
 0x2d7   :  { %v1117_v49 = vpop.eup %1116  ;;  %v444_v35 = vadd.f32 %v421_v33, %v316_v14 }
 0x2d8   :  { %v1119_v22 = vpop.eup %1118  ;;  %v859_v10 = vmul.f32 0.6931472, %v1117_v49  ;;  %v844_v54 = vld [vmem:[#allocation3 + $0x20] sm:$0xff] }
 0x2d9   :  { %461 = vst.msk [vmem:[#allocation4 + $0x40] sm:$0xff] %vm22_vm1, %v444_v35  ;;  %v1121_v26 = vpop.eup %1120  ;;  %1132 = vlog2.f32 %v844_v54  ;;  %v873_v56 = vmul.f32 0.6931472, %v1119_v22  ;;  %v1852_v49 = vld [vmem:[#allocation9_spill] sm:$0xff] }
 0x2da   :  { %v889_v3 = vadd.f32 %v859_v10, %v825_v38  ;;  %v425_v39 = vpop.xlane.xlu1 %424  ;;  %1134 = vpow2.f32 %v559_v55  ;;  %v877_v52 = vmul.f32 0.6931472, %v1121_v26  ;;  %vm914_vm9 = vcmp.ne.s32.totalorder %v1852_v49, 4294967196  ;;  %v828_v10 = vld [vmem:[#allocation2 + $0x20] sm:$0xff] }
 0x2db   :  { %v1123_v40 = vpop.eup %1122  ;;  %v446_v59 = vadd.f32 %v425_v39, %v318_v62  ;;  %v896_v6 = vadd.f32 %v873_v56, %v832_v24  ;;  %v586_v62 = vld [vmem:[#allocation3 + $0x28] sm:$0xff]  ;;  %v924_v56 = vld [vmem:[#allocation4 + $0x20] sm:$0xff]  ;;  %v1853_v24 = vld [vmem:[#allocation11_spill] sm:$0xff] }
 0x2dc   :  { %v1125_v63 = vpop.eup %1124  ;;  %v937_v7 = vsub.f32 %v889_v3, %v921_v51  ;;  %v863_v19 = vmul.f32 0.6931472, %v1123_v40  ;;  %v852_v18 = vld [vmem:[#allocation3 + $0x60] sm:$0xff]  ;;  %v898_v12 = vadd.f32 %v877_v52, %v834_v27  ;;  %v849_v26 = vld [vmem:[#allocation3 + $0x48] sm:$0xff]  ;;  %vm916_vm11 = vcmp.ne.s32.totalorder %v1853_v24, 4294967196  ;;  %v319_v27 = vld [vmem:[#allocation4 + $0x58] sm:$0xff] }
 0x2dd   :  { %v869_v60 = vmul.f32 0.6931472, %v1125_v63  ;;  %463 = vst.msk [vmem:[#allocation4 + $0x50] sm:$0xff] %vm22_vm1, %v446_v59  ;;  %v1127_v0 = vpop.eup %1126  ;;  %1136 = vlog2.f32 %v852_v18  ;;  %v1153_v51 = vld [vmem:[%s1804_s3 + $0x20] sm:$0xff]  ;;  %v851_v18 = vld [vmem:[#allocation3 + $0x58] sm:$0xff] }
 0x2de   :  { %v953_v4 = vsel %vm905_vm5, %v937_v7, 0.0  ;;  %v891_v47 = vadd.f32 %v863_v19, %v827_v48  ;;  %v429_v36 = vpop.xlane.xlu1 %428  ;;  %1138 = vpow2.f32 %v575_v16  ;;  %v604_v17 = vmul.f32 %v1127_v0, %v588_v2  ;;  %v1129_v23 = vpop.eup %1128  ;;  %v836_v16 = vld [vmem:[#allocation2 + $0x60] sm:$0xff]  ;;  %v594_v19 = vld [vmem:[#allocation3 + $0x68] sm:$0xff] }
 0x2df   :  { %969 = vst.msk [vmem:[%s1806_s4 + $0x8] sm:$0xff] %vm22_vm1, %v953_v4  ;;  %v894_v53 = vadd.f32 %v869_v60, %v830_v41  ;;  %v448_v25 = vadd.f32 %v429_v36, %v320_v13  ;;  %v1131_v43 = vpop.eup %1130  ;;  %v612_v42 = vmul.f32 %v1129_v23, %v596_v29  ;;  %vm908_vm10 = vcmp.ne.s32.totalorder %v1153_v51, 4294967196  ;;  %v1854_v41 = vld [vmem:[#allocation14_spill] sm:$0xff]  ;;  %v831_v29 = vld [vmem:[#allocation2 + $0x38] sm:$0xff] }
 0x2e0   :  { %v939_v46 = vsub.f32 %v891_v47, %v923_v31  ;;  %v928_v37 = vld [vmem:[#allocation4 + $0x40] sm:$0xff]  ;;  %v885_v39 = vmul.f32 0.6931472, %v1131_v43  ;;  %1140 = vlog2.f32 %v849_v26  ;;  %vm918_vm12 = vcmp.ne.s32.totalorder %v1854_v41, 4294967196  ;;  %v833_v43 = vld [vmem:[#allocation2 + $0x48] sm:$0xff]  ;;  %v1155_v51 = vld [vmem:[%s1804_s3 + $0x58] sm:$0xff] }
 0x2e1   :  { %v942_v45 = vsub.f32 %v894_v53, %v926_v44  ;;  %v944_v11 = vsub.f32 %v896_v6, %v928_v37  ;;  %465 = vst.msk [vmem:[#allocation4 + $0x60] sm:$0xff] %vm22_vm1, %v448_v25  ;;  %vm915_vm15 = vcmp.ne.s32.totalorder %v1155_v51, 4294967196 }
 0x2e2   :  { %v955_v57 = vsel %vm907_vm6, %v939_v46, 0.0  ;;  %v756_v20 = vpop.xlane.xlu0 %755  ;;  %v433_v21 = vpop.xlane.xlu1 %432  ;;  %v902_v60 = vadd.f32 %v885_v39, %v838_v5 }
 0x2e3   :  { %971 = vst.msk [vmem:[%s1806_s4 + $0x18] sm:$0xff] %vm22_vm1, %v955_v57  ;;  %v958_v15 = vsel %vm910_vm7, %v942_v45, 0.0  ;;  %v960_v28 = vsel %vm912_vm8, %v944_v11, 0.0  ;;  %v780_v14 = vadd.f32 %v756_v20, %v604_v17  ;;  %v450_v61 = vadd.f32 %v433_v21, %v322_v50  ;;  %v1133_v33 = vpop.eup %1132  ;;  %v321_v21 = vld [vmem:[#allocation4 + $0x68] sm:$0xff] }
 0x2e4   :  { %974 = vst.msk [vmem:[%s1806_s4 + $0x30] sm:$0xff] %vm22_vm1, %v958_v15  ;;  %976 = vst.msk [vmem:[%s1806_s4 + $0x40] sm:$0xff] %vm22_vm1, %v960_v28  ;;  %v930_v35 = vld [vmem:[#allocation4 + $0x50] sm:$0xff]  ;;  %v865_v22 = vmul.f32 0.6931472, %v1133_v33  ;;  %v1135_v55 = vpop.eup %1134 }
 0x2e5   :  { %v946_v32 = vsub.f32 %v898_v12, %v930_v35  ;;  %796 = vst.msk [vmem:[#allocation3 + $0x38] sm:$0xff] %vm22_vm1, %v780_v14  ;;  %467 = vst.msk [vmem:[#allocation4 + $0x70] sm:$0xff] %vm22_vm1, %v450_v61  ;;  %v602_v9 = vmul.f32 %v1135_v55, %v586_v62  ;;  %v1855_v14 = vld [vmem:[#allocation7_spill] sm:$0xff]  ;;  %v927_v61 = vld [vmem:[#allocation4 + $0x38] sm:$0xff] }
 0x2e6   :  { %v772_v54 = vpop.xlane.xlu0 %771  ;;  %v892_v38 = vadd.f32 %v865_v22, %v828_v10  ;;  %vm911_vm13 = vcmp.ne.s32.totalorder %v1855_v14, 4294967196  ;;  %v1154_v22 = vld [vmem:[%s1804_s3 + $0x48] sm:$0xff]  ;;  %v323_v55 = vld [vmem:[#allocation4 + $0x78] sm:$0xff] }
 0x2e7   :  { %v962_v3 = vsel %vm914_vm9, %v946_v32, 0.0  ;;  %v788_v40 = vadd.f32 %v772_v54, %v612_v42  ;;  %v1137_v34 = vpop.eup %1136  ;;  %vm913_vm14 = vcmp.ne.s32.totalorder %v1154_v22, 4294967196  ;;  %v835_v54 = vld [vmem:[#allocation2 + $0x58] sm:$0xff] }
 0x2e8   :  { %978 = vst.msk [vmem:[%s1806_s4 + $0x50] sm:$0xff] %vm22_vm1, %v962_v3  ;;  %v940_v59 = vsub.f32 %v892_v38, %v924_v56  ;;  %v881_v63 = vmul.f32 0.6931472, %v1137_v34  ;;  %v1139_v1 = vpop.eup %1138  ;;  %v932_v4 = vld [vmem:[#allocation4 + $0x60] sm:$0xff] }
 0x2e9   :  { %804 = vst.msk [vmem:[#allocation3 + $0x78] sm:$0xff] %vm22_vm1, %v788_v40  ;;  %v610_v8 = vmul.f32 %v1139_v1, %v594_v19 }
 0x2ea   :  { %v752_v7 = vpop.xlane.xlu0 %751  ;;  %v956_v13 = vsel %vm908_vm10, %v940_v59, 0.0  ;;  %v900_v48 = vadd.f32 %v881_v63, %v836_v16  ;;  %v1141_v37 = vpop.eup %1140  ;;  %v829_v63 = vld [vmem:[#allocation2 + $0x28] sm:$0xff] }
 0x2eb   :  { %v778_v0 = vadd.f32 %v752_v7, %v602_v9  ;;  %972 = vst.msk [vmem:[%s1806_s4 + $0x20] sm:$0xff] %vm22_vm1, %v956_v13  ;;  %v875_v17 = vmul.f32 0.6931472, %v1141_v37  ;;  %v1156_v16 = vld [vmem:[%s1804_s3 + $0x28] sm:$0xff] }
 0x2ec   :  { %v847_v47 = vld [vmem:[#allocation3 + $0x38] sm:$0xff]  ;;  %v934_v52 = vld [vmem:[#allocation4 + $0x70] sm:$0xff]  ;;  %v948_v36 = vsub.f32 %v900_v48, %v932_v4  ;;  %vm909_vm0 = vcmp.ne.s32.totalorder %v1156_v16, 4294967196  ;;  %v925_v7 = vld [vmem:[#allocation4 + $0x28] sm:$0xff] }
 0x2ed   :  { %1142 = vlog2.f32 %v847_v47  ;;  %v950_v2 = vsub.f32 %v902_v60, %v934_v52  ;;  %794 = vst.msk [vmem:[#allocation3 + $0x28] sm:$0xff] %vm22_vm1, %v778_v0  ;;  %v897_v33 = vadd.f32 %v875_v17, %v833_v43  ;;  %v837_v60 = vld [vmem:[#allocation2 + $0x68] sm:$0xff]  ;;  %v839_v0 = vld [vmem:[#allocation2 + $0x78] sm:$0xff] }
 0x2ee   :  { %1144 = vlog2.f32 %v851_v18  ;;  %v768_v31 = vpop.xlane.xlu0 %767  ;;  %v964_v53 = vsel %vm916_vm11, %v948_v36, 0.0  ;;  %v1157_v4 = vld [vmem:[%s1804_s3 + $0x68] sm:$0xff]  ;;  %v1158_v36 = vld [vmem:[%s1804_s3 + $0x78] sm:$0xff] }
 0x2ef   :  { %v966_v6 = vsel %vm918_vm12, %v950_v2, 0.0  ;;  %v786_v25 = vadd.f32 %v768_v31, %v610_v8  ;;  %980 = vst.msk [vmem:[%s1806_s4 + $0x60] sm:$0xff] %vm22_vm1, %v964_v53  ;;  %vm917_vm2 = vcmp.ne.s32.totalorder %v1157_v4, 4294967196  ;;  %vm919_vm3 = vcmp.ne.s32.totalorder %v1158_v36, 4294967196 }
 0x2f0   :  { %982 = vst.msk [vmem:[%s1806_s4 + $0x70] sm:$0xff] %vm22_vm1, %v966_v6  ;;  %v855_v44 = vld [vmem:[#allocation3 + $0x78] sm:$0xff] }
 0x2f1   :  { %802 = vst.msk [vmem:[#allocation3 + $0x68] sm:$0xff] %vm22_vm1, %v786_v25 }
 0x2f2   :  { %v423_v58 = vpop.xlane.xlu0 %422 }
 0x2f3   :  { %v445_v46 = vadd.f32 %v423_v58, %v317_v30 }
 0x2f4   :  { %v845_v50 = vld [vmem:[#allocation3 + $0x28] sm:$0xff] }
 0x2f5   :  { %1146 = vlog2.f32 %v845_v50  ;;  %462 = vst.msk [vmem:[#allocation4 + $0x48] sm:$0xff] %vm22_vm1, %v445_v46 }
 0x2f6   :  { %1148 = vlog2.f32 %v855_v44  ;;  %v427_v45 = vpop.xlane.xlu0 %426 }
 0x2f7   :  { %v1143_v11 = vpop.eup %1142  ;;  %v447_v23 = vadd.f32 %v427_v45, %v319_v27 }
 0x2f8   :  { %v1145_v57 = vpop.eup %1144  ;;  %v871_v12 = vmul.f32 0.6931472, %v1143_v11  ;;  %v853_v20 = vld [vmem:[#allocation3 + $0x68] sm:$0xff] }
 0x2f9   :  { %1150 = vlog2.f32 %v853_v20  ;;  %464 = vst.msk [vmem:[#allocation4 + $0x58] sm:$0xff] %vm22_vm1, %v447_v23  ;;  %v879_v49 = vmul.f32 0.6931472, %v1145_v57 }
 0x2fa   :  { %v895_v15 = vadd.f32 %v871_v12, %v831_v29  ;;  %v431_v28 = vpop.xlane.xlu0 %430 }
 0x2fb   :  { %v449_v35 = vadd.f32 %v431_v28, %v321_v21  ;;  %v899_v39 = vadd.f32 %v879_v49, %v835_v54 }
 0x2fc   :  { %v943_v32 = vsub.f32 %v895_v15, %v927_v61  ;;  %v929_v42 = vld [vmem:[#allocation4 + $0x48] sm:$0xff] }
 0x2fd   :  { %v945_v10 = vsub.f32 %v897_v33, %v929_v42  ;;  %466 = vst.msk [vmem:[#allocation4 + $0x68] sm:$0xff] %vm22_vm1, %v449_v35 }
 0x2fe   :  { %v959_v62 = vsel %vm911_vm13, %v943_v32, 0.0  ;;  %v435_v38 = vpop.xlane.xlu0 %434 }
 0x2ff   :  { %v1147_v26 = vpop.eup %1146  ;;  %975 = vst.msk [vmem:[%s1806_s4 + $0x38] sm:$0xff] %vm22_vm1, %v959_v62  ;;  %v961_v3 = vsel %vm913_vm14, %v945_v10, 0.0  ;;  %v451_v40 = vadd.f32 %v435_v38, %v323_v55 }
 0x300   :  { %v1149_v34 = vpop.eup %1148  ;;  %v867_v56 = vmul.f32 0.6931472, %v1147_v26  ;;  %977 = vst.msk [vmem:[%s1806_s4 + $0x48] sm:$0xff] %vm22_vm1, %v961_v3  ;;  %v931_v59 = vld [vmem:[#allocation4 + $0x58] sm:$0xff] }
 0x301   :  { %v947_v9 = vsub.f32 %v899_v39, %v931_v59  ;;  %468 = vst.msk [vmem:[#allocation4 + $0x78] sm:$0xff] %vm22_vm1, %v451_v40  ;;  %v887_v18 = vmul.f32 0.6931472, %v1149_v34 }
 0x302   :  { %v893_v1 = vadd.f32 %v867_v56, %v829_v63 }
 0x303   :  { %v1151_v5 = vpop.eup %1150  ;;  %v963_v19 = vsel %vm915_vm15, %v947_v9, 0.0  ;;  %v903_v52 = vadd.f32 %v887_v18, %v839_v0 }
 0x304   :  { %v941_v13 = vsub.f32 %v893_v1, %v925_v7  ;;  %979 = vst.msk [vmem:[%s1806_s4 + $0x58] sm:$0xff] %vm22_vm1, %v963_v19  ;;  %v883_v48 = vmul.f32 0.6931472, %v1151_v5  ;;  %v933_v47 = vld [vmem:[#allocation4 + $0x68] sm:$0xff] }
 0x306   :  { %v957_v24 = vsel %vm909_vm0, %v941_v13, 0.0  ;;  %v901_v41 = vadd.f32 %v883_v48, %v837_v60 }
 0x307   :  { %973 = vst.msk [vmem:[%s1806_s4 + $0x28] sm:$0xff] %vm22_vm1, %v957_v24 }
 0x308   :  { %v949_v2 = vsub.f32 %v901_v41, %v933_v47  ;;  %v935_v8 = vld [vmem:[#allocation4 + $0x78] sm:$0xff] }
 0x309   :  { %v951_v31 = vsub.f32 %v903_v52, %v935_v8 }
 0x30a   :  { %v965_v53 = vsel %vm917_vm2, %v949_v2, 0.0 }
 0x30b   :  { %981 = vst.msk [vmem:[%s1806_s4 + $0x68] sm:$0xff] %vm22_vm1, %v965_v53  ;;  %v967_v6 = vsel %vm919_vm3, %v951_v31, 0.0 }
 0x30c   :  { %983 = vst.msk [vmem:[%s1806_s4 + $0x78] sm:$0xff] %vm22_vm1, %v967_v6 }

</bundles_post_ra>
